<compile_context>
chip_gen: v6e
topology: v6e:2x2x1
jax: 0.10.0
libtpu: 0.0.40
codegen_flags: <defaults>
</compile_context>

<pallas_src>
import functools
import math

import jax
import jax.numpy as jnp
import numpy as np
from jax.experimental import pallas as pl
from jax.experimental.pallas import tpu as pltpu

KS = 7            # kernel_size
P = KS // 2       # padding
EPS = 1e-5        # BatchNorm1d default eps

# Explicit scoped-VMEM limit: safe on v5e/v6e (128 MiB physical) and v7x (64 MiB);
# double-buffered ~4 MiB blocks plus the small pooled buffers fit comfortably.
_VMEM_LIMIT = 32 * 1024 * 1024
# ~4 MiB per streamed block (review: 2-4 MiB reaches ~85%+ of HBM roofline while
# leaving double-buffer headroom under the 32 MiB scoped limit).
_TARGET_BLOCK_BYTES = 4 << 20


# --------------------------------------------------------------------------
# pass 1: pooled means (the only pass that reads x)
# --------------------------------------------------------------------------
def _pool_kernel(x_ref, xh_ref, xw_ref, *, inv_h, inv_w):
    # x_ref:  (1, tc, th, W)  NCHW block of the input
    # xh_ref: (1, tc, th)     lane-dense mean over W for this block (written every step)
    # xw_ref: (1, tc, W)      lane-dense running sum over the h grid axis; /H at the end
    hi = pl.program_id(2)
    x = x_ref[...]

    # f32-accumulated reductions directly on the (possibly bf16) block — no full-block cast.
    # TODO(synk): on v7x (3.2 TB/s HBM) the lane reduce below could saturate the 2 XLUs;
    # if profiling shows that, reformulate the W-mean as an MXU dot against ones(W, 1).
    xh_ref[...] = (jnp.sum(x, axis=3, dtype=jnp.float32) * inv_w).astype(xh_ref.dtype)

    @pl.when(hi == 0)
    def _():
        xw_ref[...] = jnp.zeros_like(xw_ref)

    xw_ref[...] += jnp.sum(x, axis=2, dtype=jnp.float32)

    @pl.when(hi == pl.num_programs(2) - 1)
    def _():
        xw_ref[...] = xw_ref[...] * inv_h


# --------------------------------------------------------------------------
# pass 2: grouped conv1d + BatchNorm1d (training stats) + sigmoid (tiny data)
# --------------------------------------------------------------------------
def _conv_bn_sig_kernel(xh_ref, xw_ref, w_ref, gamma_ref, beta_ref,
                        sh_ref, sw_ref):
    # xh_ref: (b, c, h)    pooled rows (f32)
    # xw_ref: (b, c, w)    pooled cols (f32)
    # w_ref:  (KS*c, c)    stacked block-diagonal grouped-conv weight
    # gamma_ref, beta_ref: (1, c)
    # sh_ref: (b, c, h);  sw_ref: (b, c, w)
    gamma = gamma_ref[...]
    beta = beta_ref[...]
    b, c, h = xh_ref.shape
    w = xw_ref.shape[2]

    def stack_windows(x_bcl):
        # (b, c, L) -> (b*L, KS*c): tap-k window occupies columns [k*c, (k+1)*c).
        bb, cc, L = x_bcl.shape
        xt = jnp.transpose(x_bcl, (0, 2, 1))                 # (b, L, c)  channels->lanes
        zp = jnp.zeros((bb, P, cc), jnp.float32)
        xp = jnp.concatenate([zp, xt, zp], axis=1)           # (b, L + 2P, c)
        wins = [xp[:, k:k + L, :] for k in range(KS)]
        return jnp.concatenate(wins, axis=-1).reshape(bb * L, KS * cc)

    # One MXU dot serves both branches and all 7 taps (M = b*(h+w), K = 7c, N = c).
    m = jnp.concatenate([stack_windows(xh_ref[...].astype(jnp.float32)),
                         stack_windows(xw_ref[...].astype(jnp.float32))], axis=0)
    conv = jnp.dot(m, w_ref[...], preferred_element_type=jnp.float32)   # (b*(h+w), c)

    def bn_sig(y):
        # BatchNorm1d, training mode: biased batch statistics over (b, L), per channel.
        mean = jnp.mean(y, axis=0, keepdims=True)
        var = jnp.mean((y - mean) ** 2, axis=0, keepdims=True)
        z = (y - mean) * jax.lax.rsqrt(var + EPS) * gamma + beta
        return 1.0 / (1.0 + jnp.exp(-z))                                 # sigmoid (EUP)

    # BN stats are computed per branch (two independent bn() calls in the module).
    s_h = bn_sig(conv[: b * h]).reshape(b, h, c)
    s_w = bn_sig(conv[b * h:]).reshape(b, w, c)
    sh_ref[...] = jnp.transpose(s_h, (0, 2, 1)).astype(sh_ref.dtype)     # back to (b, c, h)
    sw_ref[...] = jnp.transpose(s_w, (0, 2, 1)).astype(sw_ref.dtype)


# --------------------------------------------------------------------------
# pass 3: lane-dense tiled outer-product expansion (the only pass writing out)
# --------------------------------------------------------------------------
def _expand_kernel(sh_ref, sw_ref, out_ref):
    # sh_ref: (1, tc, th) lane-dense; sw_ref: (1, tc, W) lane-dense (constant over hi)
    # out_ref: (1, tc, th, W) — single broadcast multiply straight into the block.
    sh = sh_ref[...][:, :, :, None]          # (1, tc, th, 1)
    sw = sw_ref[...][:, :, None, :]          # (1, tc, 1, W)
    out_ref[...] = (sh * sw).astype(out_ref.dtype)


# --------------------------------------------------------------------------
# glue
# --------------------------------------------------------------------------
def expand_grouped_weight(w_grp):
    """(c, 8, ks) grouped Conv1d weight -> block-diagonal (ks, c_in, c_out)."""
    # TODO(synk): for large channel counts keep the grouped (c, 8, ks) weight and use a
    # per-group / channel-blocked formulation in pass 2 instead of this dense expansion
    # (7*c*c*4 bytes of VMEM — hits v7x's 64 MiB first — and c/8 wasted MXU flops);
    # harmless at small c.
    c, gsz, _ = w_grp.shape
    gid = jnp.arange(c) // gsz
    mask = (gid[:, None] == gid[None, :]).astype(w_grp.dtype)      # (c_in, c_out)
    wt = jnp.transpose(w_grp, (2, 1, 0))                           # (ks, 8, c_out)
    jpos = jnp.arange(c) % gsz
    return wt[:, jpos, :] * mask[None, :, :]                       # (ks, c_in, c_out)


def _pick_tiles(b, c, h, w, itemsize, target_bytes=_TARGET_BLOCK_BYTES):
    """Pick (tc, th) so one streamed (1, tc, th, W) block is roughly `target_bytes`."""
    # Channel-tile candidates: divisors of c that are multiples of 8 (c itself included
    # since c % 8 == 0), descending.  Handles non-power-of-two counts like 24 or 40.
    tc_cands = [d for d in range(c, 7, -1) if c % d == 0 and d % 8 == 0]
    # H-tile candidates: multiples of 128 dividing h (descending) — keeps the lane-dense
    # x_h / s_h blocks and the output block (8,128)-tileable — else the full h.
    if h % 128 == 0:
        th_cands = [d for d in range(h, 127, -1) if h % d == 0 and d % 128 == 0]
    else:
        th_cands = [h]

    ci = hi = 0
    # Shrink until one block fits the budget: channels first (more blocks on a "parallel"
    # grid axis -> both v7x TensorCores get work), then the H tile.
    while tc_cands[ci] * th_cands[hi] * w * itemsize > target_bytes:
        if ci + 1 < len(tc_cands):
            ci += 1
        elif hi + 1 < len(th_cands):
            hi += 1
        else:
            break
    tc, th = tc_cands[ci], th_cands[hi]
    # v7x megacore: with b == 1 make sure the channel ("parallel") axis has >= 2 blocks.
    if b == 1 and c // tc < 2 and ci + 1 < len(tc_cands):
        tc = tc_cands[ci + 1]
    return tc, th


def sasa_forward(x, w_grp, gamma, beta):
    """x: (b, c, h, w); w_grp: (c, 8, ks) grouped Conv1d weight -> (b, c, h, w)."""
    b, c, h, w = x.shape
    assert c % 8 == 0, "channels must be a multiple of 8 (groups = c // 8)"
    w_stack = expand_grouped_weight(w_grp).astype(jnp.float32).reshape(KS * c, c)
    gamma2 = gamma.reshape(1, c).astype(jnp.float32)
    beta2 = beta.reshape(1, c).astype(jnp.float32)

    tc, th = _pick_tiles(b, c, h, w, x.dtype.itemsize)
    assert c % tc == 0 and h % th == 0
    grid = (b, c // tc, h // th)

    # ---- pass 1: pooled means; reads x exactly once with streamed blocks.
    # Lane-dense 3-D outputs: x_h block (1, tc, th) (unmasked vst, dense writeback DMA
    # each h step), x_w block (1, tc, W) accumulator resident in VMEM across hi.
    x_h, x_w = pl.pallas_call(
        functools.partial(_pool_kernel, inv_h=1.0 / h, inv_w=1.0 / w),
        grid=grid,
        in_specs=[pl.BlockSpec((1, tc, th, w), lambda bi, ci, hi: (bi, ci, hi, 0))],
        out_specs=[
            pl.BlockSpec((1, tc, th), lambda bi, ci, hi: (bi, ci, hi)),
            pl.BlockSpec((1, tc, w), lambda bi, ci, hi: (bi, ci, 0)),
        ],
        out_shape=[
            jax.ShapeDtypeStruct((b, c, h), jnp.float32),
            jax.ShapeDtypeStruct((b, c, w), jnp.float32),
        ],
        compiler_params=pltpu.CompilerParams(
            dimension_semantics=("parallel", "parallel", "arbitrary"),
            vmem_limit_bytes=_VMEM_LIMIT),
    )(x)

    # ---- pass 2: conv + BN + sigmoid on the tiny pooled tensors (grid-less, no reshapes).
    # TODO(synk): BN is training-mode batch stats only (matches nn.BatchNorm1d default);
    # eval-mode running statistics / running-stat updates are not modeled.
    # TODO(synk): grid-less pass 2 holds the pooled tensors + dense 7*c*c weight in VMEM;
    # for very large c or b*(h+w) switch to a channel-blocked grid (scaling cliff on v7x).
    s_h, s_w = pl.pallas_call(
        _conv_bn_sig_kernel,
        out_shape=[
            jax.ShapeDtypeStruct((b, c, h), jnp.float32),
            jax.ShapeDtypeStruct((b, c, w), jnp.float32),
        ],
        in_specs=[pl.BlockSpec(memory_space=pltpu.MemorySpace.VMEM)] * 5,
        out_specs=[pl.BlockSpec(memory_space=pltpu.MemorySpace.VMEM)] * 2,
        compiler_params=pltpu.CompilerParams(vmem_limit_bytes=_VMEM_LIMIT),
    )(x_h, x_w, w_stack, gamma2, beta2)

    # ---- pass 3: tiled outer-product expansion, W on the lane axis.
    # s_h / s_w blocks are lane-dense 3-D (no padded VMEM footprint, no scattered DMA);
    # the per-step s_h copy is tc*th*4 B, <1% of the multi-MiB output block, and s_w is
    # constant over hi so Pallas skips its re-copy.  Default double buffering is kept
    # (blocks are already ~4 MiB).
    out = pl.pallas_call(
        _expand_kernel,
        grid=grid,
        in_specs=[
            pl.BlockSpec((1, tc, th), lambda bi, ci, hi: (bi, ci, hi)),
            pl.BlockSpec((1, tc, w), lambda bi, ci, hi: (bi, ci, 0)),
        ],
        out_specs=pl.BlockSpec((1, tc, th, w), lambda bi, ci, hi: (bi, ci, hi, 0)),
        out_shape=jax.ShapeDtypeStruct((b, c, h, w), x.dtype),
        compiler_params=pltpu.CompilerParams(
            dimension_semantics=("parallel", "parallel", "parallel"),
            vmem_limit_bytes=_VMEM_LIMIT),
    )(s_h, s_w)
    return out


# --------------------------------------------------------------------------
# pure-JAX reference (identical math, NCHW)
# --------------------------------------------------------------------------
def sasa_reference(x, w_grp, gamma, beta):
    b, c, h, w = x.shape
    w_full = expand_grouped_weight(w_grp)

    def br(xs):  # xs: (b, c, L)
        L = xs.shape[-1]
        xp = jnp.pad(xs, ((0, 0), (0, 0), (P, P)))
        conv = jnp.zeros((b, c, L), jnp.float32)
        for k in range(KS):
            conv = conv + jnp.einsum('bil,io->bol', xp[:, :, k:k + L], w_full[k])
        mean = jnp.mean(conv, axis=(0, 2), keepdims=True)
        var = jnp.mean((conv - mean) ** 2, axis=(0, 2), keepdims=True)
        y = ((conv - mean) / jnp.sqrt(var + EPS)
             * gamma.reshape(1, c, 1) + beta.reshape(1, c, 1))
        return 1.0 / (1.0 + jnp.exp(-y))

    s_h = br(jnp.mean(x, axis=3))  # (b, c, h)
    s_w = br(jnp.mean(x, axis=2))  # (b, c, w)
    return s_h[:, :, :, None] * s_w[:, :, None, :]


if __name__ == "__main__":
    B, C, H, W = 2, 16, 16, 16          # C must be a multiple of 8 (groups = C // 8)
    key = jax.random.PRNGKey(0)
    k1, k2, k3, k4 = jax.random.split(key, 4)

    # Grouped Conv1d weight in PyTorch layout (c_out, c_in_per_group=8, ks).
    bound = 1.0 / math.sqrt(8 * KS)
    w_grp = jax.random.uniform(k1, (C, 8, KS), jnp.float32, -bound, bound)

    # BN affine params (defaults are gamma=1, beta=0; perturb to exercise them).
    gamma = 1.0 + 0.1 * jax.random.normal(k2, (C,), jnp.float32)
    beta = 0.1 * jax.random.normal(k3, (C,), jnp.float32)

    x = jax.random.normal(k4, (B, C, H, W), jnp.float32)

    out = jax.block_until_ready(jax.jit(sasa_forward)(x, w_grp, gamma, beta))
    ref = jax.block_until_ready(sasa_reference(x, w_grp, gamma, beta))

    assert out.shape == (B, C, H, W)
    np.testing.assert_allclose(np.asarray(out), np.asarray(ref), rtol=1e-4, atol=1e-5)
    print("KERNEL_OK")
</pallas_src>

<mosaic_0001>
module attributes {stable_mosaic.version = 11 : i64} {
  func.func @_expand_kernel(%arg0: i32, %arg1: i32, %arg2: i32, %arg3: memref<1x16x16xf32, #tpu.memory_space<vmem>>, %arg4: memref<1x16x16xf32, #tpu.memory_space<vmem>>, %arg5: memref<1x16x16x16xf32, #tpu.memory_space<vmem>>) attributes {dimension_semantics = [#tpu.dimension_semantics<parallel>, #tpu.dimension_semantics<parallel>, #tpu.dimension_semantics<parallel>], iteration_bounds = array<i64: 2, 1, 1>, scalar_prefetch = 0 : i64, scratch_operands = 0 : i64, tpu.core_type = #tpu.core_type<tc>, window_params = [{transform_indices = @transform_0, window_bounds = array<i64: 1, 16, 16>}, {transform_indices = @transform_1, window_bounds = array<i64: 1, 16, 16>}, {transform_indices = @transform_2, window_bounds = array<i64: 1, 16, 16, 16>}]} {
    %c0 = arith.constant 0 : index
    %c0_0 = arith.constant 0 : index
    %c0_1 = arith.constant 0 : index
    %0 = vector.load %arg3[%c0, %c0_0, %c0_1] : memref<1x16x16xf32, #tpu.memory_space<vmem>>, vector<1x16x16xf32>
    %1 = vector.shape_cast %0 : vector<1x16x16xf32> to vector<1x16x16x1xf32>
    %c0_2 = arith.constant 0 : index
    %c0_3 = arith.constant 0 : index
    %c0_4 = arith.constant 0 : index
    %2 = vector.load %arg4[%c0_2, %c0_3, %c0_4] : memref<1x16x16xf32, #tpu.memory_space<vmem>>, vector<1x16x16xf32>
    %3 = vector.shape_cast %2 : vector<1x16x16xf32> to vector<1x16x1x16xf32>
    %4 = vector.broadcast %1 : vector<1x16x16x1xf32> to vector<1x16x16x16xf32>
    %5 = vector.broadcast %3 : vector<1x16x1x16xf32> to vector<1x16x16x16xf32>
    %6 = arith.mulf %4, %5 : vector<1x16x16x16xf32>
    %c0_5 = arith.constant 0 : index
    %c0_6 = arith.constant 0 : index
    %c0_7 = arith.constant 0 : index
    %c0_8 = arith.constant 0 : index
    %7 = vector.load %arg5[%c0_5, %c0_6, %c0_7, %c0_8] : memref<1x16x16x16xf32, #tpu.memory_space<vmem>>, vector<1x16x16x16xf32>
    tpu.vector_store %arg5[%c0_5, %c0_6, %c0_7, %c0_8], %6 {strides = array<i32>} : memref<1x16x16x16xf32, #tpu.memory_space<vmem>>, vector<1x16x16x16xf32>,
    return
  }
  func.func @transform_0(%arg0: i32, %arg1: i32, %arg2: i32) -> (i32, i32, i32) {
    %c0_i32 = arith.constant 0 : i32
    return %arg0, %arg1, %arg2 : i32, i32, i32
  }
  func.func @transform_1(%arg0: i32, %arg1: i32, %arg2: i32) -> (i32, i32, i32) {
    %c0_i32 = arith.constant 0 : i32
    %c0_i32_0 = arith.constant 0 : i32
    return %arg0, %arg1, %c0_i32 : i32, i32, i32
  }
  func.func @transform_2(%arg0: i32, %arg1: i32, %arg2: i32) -> (i32, i32, i32, i32) {
    %c0_i32 = arith.constant 0 : i32
    %c0_i32_0 = arith.constant 0 : i32
    return %arg0, %arg1, %arg2, %c0_i32 : i32, i32, i32, i32
  }
}

module attributes {stable_mosaic.version = 11 : i64} {
  func.func @_pool_kernel(%arg0: i32, %arg1: i32, %arg2: i32, %arg3: memref<1x16x16x16xf32, #tpu.memory_space<vmem>>, %arg4: memref<1x16x16xf32, #tpu.memory_space<vmem>>, %arg5: memref<1x16x16xf32, #tpu.memory_space<vmem>>) attributes {dimension_semantics = [#tpu.dimension_semantics<parallel>, #tpu.dimension_semantics<parallel>, #tpu.dimension_semantics<arbitrary>], iteration_bounds = array<i64: 2, 1, 1>, scalar_prefetch = 0 : i64, scratch_operands = 0 : i64, tpu.core_type = #tpu.core_type<tc>, window_params = [{transform_indices = @transform_0, window_bounds = array<i64: 1, 16, 16, 16>}, {transform_indices = @transform_1, window_bounds = array<i64: 1, 16, 16>}, {transform_indices = @transform_2, window_bounds = array<i64: 1, 16, 16>}]} {
    %c0 = arith.constant 0 : index
    %c0_0 = arith.constant 0 : index
    %c0_1 = arith.constant 0 : index
    %c0_2 = arith.constant 0 : index
    %0 = vector.load %arg3[%c0, %c0_0, %c0_1, %c0_2] : memref<1x16x16x16xf32, #tpu.memory_space<vmem>>, vector<1x16x16x16xf32>
    %cst = arith.constant dense<0.000000e+00> : vector<1x16x16xf32>
    %1 = vector.multi_reduction <add>, %0, %cst [3] : vector<1x16x16x16xf32> to vector<1x16x16xf32>
    %cst_3 = arith.constant 6.250000e-02 : f32
    %2 = vector.broadcast %cst_3 : f32 to vector<1x16x16xf32>
    %3 = arith.mulf %1, %2 : vector<1x16x16xf32>
    %c0_4 = arith.constant 0 : index
    %c0_5 = arith.constant 0 : index
    %c0_6 = arith.constant 0 : index
    %4 = vector.load %arg4[%c0_4, %c0_5, %c0_6] : memref<1x16x16xf32, #tpu.memory_space<vmem>>, vector<1x16x16xf32>
    tpu.vector_store %arg4[%c0_4, %c0_5, %c0_6], %3 {strides = array<i32>} : memref<1x16x16xf32, #tpu.memory_space<vmem>>, vector<1x16x16xf32>,
    %c0_i32 = arith.constant 0 : i32
    %5 = arith.cmpi eq, %arg2, %c0_i32 : i32
    %6 = arith.extui %5 : i1 to i32
    %c0_i32_7 = arith.constant 0 : i32
    %7 = arith.cmpi ne, %6, %c0_i32_7 : i32
    scf.if %7 {
      %cst_17 = arith.constant 0.000000e+00 : f32
      %15 = vector.broadcast %cst_17 : f32 to vector<1x16x16xf32>
      %c0_18 = arith.constant 0 : index
      %c0_19 = arith.constant 0 : index
      %c0_20 = arith.constant 0 : index
      %16 = vector.load %arg5[%c0_18, %c0_19, %c0_20] : memref<1x16x16xf32, #tpu.memory_space<vmem>>, vector<1x16x16xf32>
      tpu.vector_store %arg5[%c0_18, %c0_19, %c0_20], %15 {strides = array<i32>} : memref<1x16x16xf32, #tpu.memory_space<vmem>>, vector<1x16x16xf32>,
    } else {
    }
    %c0_8 = arith.constant 0 : index
    %c0_9 = arith.constant 0 : index
    %c0_10 = arith.constant 0 : index
    %8 = vector.load %arg5[%c0_8, %c0_9, %c0_10] : memref<1x16x16xf32, #tpu.memory_space<vmem>>, vector<1x16x16xf32>
    %cst_11 = arith.constant dense<0.000000e+00> : vector<1x16x16xf32>
    %9 = vector.multi_reduction <add>, %0, %cst_11 [2] : vector<1x16x16x16xf32> to vector<1x16x16xf32>
    %10 = arith.addf %8, %9 : vector<1x16x16xf32>
    %c0_12 = arith.constant 0 : index
    %c0_13 = arith.constant 0 : index
    %c0_14 = arith.constant 0 : index
    %11 = vector.load %arg5[%c0_12, %c0_13, %c0_14] : memref<1x16x16xf32, #tpu.memory_space<vmem>>, vector<1x16x16xf32>
    tpu.vector_store %arg5[%c0_12, %c0_13, %c0_14], %10 {strides = array<i32>} : memref<1x16x16xf32, #tpu.memory_space<vmem>>, vector<1x16x16xf32>,
    %c0_i32_15 = arith.constant 0 : i32
    %12 = arith.cmpi eq, %arg2, %c0_i32_15 : i32
    %13 = arith.extui %12 : i1 to i32
    %c0_i32_16 = arith.constant 0 : i32
    %14 = arith.cmpi ne, %13, %c0_i32_16 : i32
    scf.if %14 {
      %c0_17 = arith.constant 0 : index
      %c0_18 = arith.constant 0 : index
      %c0_19 = arith.constant 0 : index
      %15 = vector.load %arg5[%c0_17, %c0_18, %c0_19] : memref<1x16x16xf32, #tpu.memory_space<vmem>>, vector<1x16x16xf32>
      %cst_20 = arith.constant 6.250000e-02 : f32
      %16 = vector.broadcast %cst_20 : f32 to vector<1x16x16xf32>
      %17 = arith.mulf %15, %16 : vector<1x16x16xf32>
      %c0_21 = arith.constant 0 : index
      %c0_22 = arith.constant 0 : index
      %c0_23 = arith.constant 0 : index
      %18 = vector.load %arg5[%c0_21, %c0_22, %c0_23] : memref<1x16x16xf32, #tpu.memory_space<vmem>>, vector<1x16x16xf32>
      tpu.vector_store %arg5[%c0_21, %c0_22, %c0_23], %17 {strides = array<i32>} : memref<1x16x16xf32, #tpu.memory_space<vmem>>, vector<1x16x16xf32>,
    } else {
    }
    return
  }
  func.func @transform_0(%arg0: i32, %arg1: i32, %arg2: i32) -> (i32, i32, i32, i32) {
    %c0_i32 = arith.constant 0 : i32
    %c0_i32_0 = arith.constant 0 : i32
    return %arg0, %arg1, %arg2, %c0_i32 : i32, i32, i32, i32
  }
  func.func @transform_1(%arg0: i32, %arg1: i32, %arg2: i32) -> (i32, i32, i32) {
    %c0_i32 = arith.constant 0 : i32
    return %arg0, %arg1, %arg2 : i32, i32, i32
  }
  func.func @transform_2(%arg0: i32, %arg1: i32, %arg2: i32) -> (i32, i32, i32) {
    %c0_i32 = arith.constant 0 : i32
    %c0_i32_0 = arith.constant 0 : i32
    return %arg0, %arg1, %c0_i32 : i32, i32, i32
  }
}

module attributes {stable_mosaic.version = 11 : i64} {
  func.func @_conv_bn_sig_kernel(%arg0: memref<2x16x16xf32, #tpu.memory_space<vmem>>, %arg1: memref<2x16x16xf32, #tpu.memory_space<vmem>>, %arg2: memref<112x16xf32, #tpu.memory_space<vmem>>, %arg3: memref<1x16xf32, #tpu.memory_space<vmem>>, %arg4: memref<1x16xf32, #tpu.memory_space<vmem>>, %arg5: memref<2x16x16xf32, #tpu.memory_space<vmem>>, %arg6: memref<2x16x16xf32, #tpu.memory_space<vmem>>) attributes {dimension_semantics = [], scalar_prefetch = 0 : i64, scratch_operands = 0 : i64, tpu.core_type = #tpu.core_type<tc>} {
    %c0 = arith.constant 0 : index
    %c0_0 = arith.constant 0 : index
    %0 = vector.load %arg3[%c0, %c0_0] : memref<1x16xf32, #tpu.memory_space<vmem>>, vector<1x16xf32>
    %c0_1 = arith.constant 0 : index
    %c0_2 = arith.constant 0 : index
    %1 = vector.load %arg4[%c0_1, %c0_2] : memref<1x16xf32, #tpu.memory_space<vmem>>, vector<1x16xf32>
    %c0_3 = arith.constant 0 : index
    %c0_4 = arith.constant 0 : index
    %c0_5 = arith.constant 0 : index
    %2 = vector.load %arg0[%c0_3, %c0_4, %c0_5] : memref<2x16x16xf32, #tpu.memory_space<vmem>>, vector<2x16x16xf32>
    %3 = tpu.transpose %2, [0, 2, 1] : vector<2x16x16xf32> -> vector<2x16x16xf32>
    %cst = arith.constant 0.000000e+00 : f32
    %4 = vector.broadcast %cst : f32 to vector<2x3x16xf32>
    %5 = tpu.concatenate %4, %3, %4 in 1 : vector<2x3x16xf32>, vector<2x16x16xf32>, vector<2x3x16xf32> -> vector<2x22x16xf32>
    %6 = vector.extract_strided_slice %5 {offsets = [0, 0, 0], sizes = [2, 16, 16], strides = [1, 1, 1]} : vector<2x22x16xf32> to vector<2x16x16xf32>
    %7 = vector.extract_strided_slice %5 {offsets = [0, 1, 0], sizes = [2, 16, 16], strides = [1, 1, 1]} : vector<2x22x16xf32> to vector<2x16x16xf32>
    %8 = vector.extract_strided_slice %5 {offsets = [0, 2, 0], sizes = [2, 16, 16], strides = [1, 1, 1]} : vector<2x22x16xf32> to vector<2x16x16xf32>
    %9 = vector.extract_strided_slice %5 {offsets = [0, 3, 0], sizes = [2, 16, 16], strides = [1, 1, 1]} : vector<2x22x16xf32> to vector<2x16x16xf32>
    %10 = vector.extract_strided_slice %5 {offsets = [0, 4, 0], sizes = [2, 16, 16], strides = [1, 1, 1]} : vector<2x22x16xf32> to vector<2x16x16xf32>
    %11 = vector.extract_strided_slice %5 {offsets = [0, 5, 0], sizes = [2, 16, 16], strides = [1, 1, 1]} : vector<2x22x16xf32> to vector<2x16x16xf32>
    %12 = vector.extract_strided_slice %5 {offsets = [0, 6, 0], sizes = [2, 16, 16], strides = [1, 1, 1]} : vector<2x22x16xf32> to vector<2x16x16xf32>
    %13 = tpu.concatenate %6, %7, %8, %9, %10, %11, %12 in 2 : vector<2x16x16xf32>, vector<2x16x16xf32>, vector<2x16x16xf32>, vector<2x16x16xf32>, vector<2x16x16xf32>, vector<2x16x16xf32>, vector<2x16x16xf32> -> vector<2x16x112xf32>
    %14 = vector.shape_cast %13 : vector<2x16x112xf32> to vector<32x112xf32>
    %c0_6 = arith.constant 0 : index
    %c0_7 = arith.constant 0 : index
    %c0_8 = arith.constant 0 : index
    %15 = vector.load %arg1[%c0_6, %c0_7, %c0_8] : memref<2x16x16xf32, #tpu.memory_space<vmem>>, vector<2x16x16xf32>
    %16 = tpu.transpose %15, [0, 2, 1] : vector<2x16x16xf32> -> vector<2x16x16xf32>
    %cst_9 = arith.constant 0.000000e+00 : f32
    %17 = vector.broadcast %cst_9 : f32 to vector<2x3x16xf32>
    %18 = tpu.concatenate %17, %16, %17 in 1 : vector<2x3x16xf32>, vector<2x16x16xf32>, vector<2x3x16xf32> -> vector<2x22x16xf32>
    %19 = vector.extract_strided_slice %18 {offsets = [0, 0, 0], sizes = [2, 16, 16], strides = [1, 1, 1]} : vector<2x22x16xf32> to vector<2x16x16xf32>
    %20 = vector.extract_strided_slice %18 {offsets = [0, 1, 0], sizes = [2, 16, 16], strides = [1, 1, 1]} : vector<2x22x16xf32> to vector<2x16x16xf32>
    %21 = vector.extract_strided_slice %18 {offsets = [0, 2, 0], sizes = [2, 16, 16], strides = [1, 1, 1]} : vector<2x22x16xf32> to vector<2x16x16xf32>
    %22 = vector.extract_strided_slice %18 {offsets = [0, 3, 0], sizes = [2, 16, 16], strides = [1, 1, 1]} : vector<2x22x16xf32> to vector<2x16x16xf32>
    %23 = vector.extract_strided_slice %18 {offsets = [0, 4, 0], sizes = [2, 16, 16], strides = [1, 1, 1]} : vector<2x22x16xf32> to vector<2x16x16xf32>
    %24 = vector.extract_strided_slice %18 {offsets = [0, 5, 0], sizes = [2, 16, 16], strides = [1, 1, 1]} : vector<2x22x16xf32> to vector<2x16x16xf32>
    %25 = vector.extract_strided_slice %18 {offsets = [0, 6, 0], sizes = [2, 16, 16], strides = [1, 1, 1]} : vector<2x22x16xf32> to vector<2x16x16xf32>
    %26 = tpu.concatenate %19, %20, %21, %22, %23, %24, %25 in 2 : vector<2x16x16xf32>, vector<2x16x16xf32>, vector<2x16x16xf32>, vector<2x16x16xf32>, vector<2x16x16xf32>, vector<2x16x16xf32>, vector<2x16x16xf32> -> vector<2x16x112xf32>
    %27 = vector.shape_cast %26 : vector<2x16x112xf32> to vector<32x112xf32>
    %28 = tpu.concatenate %14, %27 in 0 : vector<32x112xf32>, vector<32x112xf32> -> vector<64x112xf32>
    %c0_10 = arith.constant 0 : index
    %c0_11 = arith.constant 0 : index
    %29 = vector.load %arg2[%c0_10, %c0_11] : memref<112x16xf32, #tpu.memory_space<vmem>>, vector<112x16xf32>
    %cst_12 = arith.constant dense<0.000000e+00> : vector<64x16xf32>
    %30 = tpu.matmul %28, %29, %cst_12 {dimension_numbers = #tpu.dot_dimension_numbers<[1], [0], [0], [1], [0, 0, 1, 1], [], []>} : vector<64x112xf32>, vector<112x16xf32>, vector<64x16xf32> -> vector<64x16xf32>
    %31 = vector.extract_strided_slice %30 {offsets = [0, 0], sizes = [32, 16], strides = [1, 1]} : vector<64x16xf32> to vector<32x16xf32>
    %cst_13 = arith.constant dense<0.000000e+00> : vector<16xf32>
    %32 = vector.multi_reduction <add>, %31, %cst_13 [0] : vector<32x16xf32> to vector<16xf32>
    %33 = vector.shape_cast %32 : vector<16xf32> to vector<1x16xf32>
    %cst_14 = arith.constant 3.200000e+01 : f32
    %34 = vector.broadcast %cst_14 : f32 to vector<1x16xf32>
    %35 = arith.divf %33, %34 : vector<1x16xf32>
    %36 = vector.broadcast %35 : vector<1x16xf32> to vector<32x16xf32>
    %37 = arith.subf %31, %36 : vector<32x16xf32>
    %38 = arith.mulf %37, %37 : vector<32x16xf32>
    %cst_15 = arith.constant dense<0.000000e+00> : vector<16xf32>
    %39 = vector.multi_reduction <add>, %38, %cst_15 [0] : vector<32x16xf32> to vector<16xf32>
    %40 = vector.shape_cast %39 : vector<16xf32> to vector<1x16xf32>
    %cst_16 = arith.constant 3.200000e+01 : f32
    %41 = vector.broadcast %cst_16 : f32 to vector<1x16xf32>
    %42 = arith.divf %40, %41 : vector<1x16xf32>
    %43 = vector.broadcast %35 : vector<1x16xf32> to vector<32x16xf32>
    %44 = arith.subf %31, %43 : vector<32x16xf32>
    %cst_17 = arith.constant 9.99999974E-6 : f32
    %45 = vector.broadcast %cst_17 : f32 to vector<1x16xf32>
    %46 = arith.addf %42, %45 : vector<1x16xf32>
    %47 = math.rsqrt %46 : vector<1x16xf32>
    %48 = vector.broadcast %47 : vector<1x16xf32> to vector<32x16xf32>
    %49 = arith.mulf %44, %48 : vector<32x16xf32>
    %50 = vector.broadcast %0 : vector<1x16xf32> to vector<32x16xf32>
    %51 = arith.mulf %49, %50 : vector<32x16xf32>
    %52 = vector.broadcast %1 : vector<1x16xf32> to vector<32x16xf32>
    %53 = arith.addf %51, %52 : vector<32x16xf32>
    %cst_18 = arith.constant 0.000000e+00 : f32
    %54 = vector.broadcast %cst_18 : f32 to vector<32x16xf32>
    %55 = arith.subf %54, %53 : vector<32x16xf32>
    %56 = math.exp %55 : vector<32x16xf32>
    %cst_19 = arith.constant 1.000000e+00 : f32
    %57 = vector.broadcast %cst_19 : f32 to vector<32x16xf32>
    %58 = arith.addf %57, %56 : vector<32x16xf32>
    %cst_20 = arith.constant 1.000000e+00 : f32
    %59 = vector.broadcast %cst_20 : f32 to vector<32x16xf32>
    %60 = arith.divf %59, %58 : vector<32x16xf32>
    %61 = vector.shape_cast %60 : vector<32x16xf32> to vector<2x16x16xf32>
    %62 = vector.extract_strided_slice %30 {offsets = [32, 0], sizes = [32, 16], strides = [1, 1]} : vector<64x16xf32> to vector<32x16xf32>
    %cst_21 = arith.constant dense<0.000000e+00> : vector<16xf32>
    %63 = vector.multi_reduction <add>, %62, %cst_21 [0] : vector<32x16xf32> to vector<16xf32>
    %64 = vector.shape_cast %63 : vector<16xf32> to vector<1x16xf32>
    %cst_22 = arith.constant 3.200000e+01 : f32
    %65 = vector.broadcast %cst_22 : f32 to vector<1x16xf32>
    %66 = arith.divf %64, %65 : vector<1x16xf32>
    %67 = vector.broadcast %66 : vector<1x16xf32> to vector<32x16xf32>
    %68 = arith.subf %62, %67 : vector<32x16xf32>
    %69 = arith.mulf %68, %68 : vector<32x16xf32>
    %cst_23 = arith.constant dense<0.000000e+00> : vector<16xf32>
    %70 = vector.multi_reduction <add>, %69, %cst_23 [0] : vector<32x16xf32> to vector<16xf32>
    %71 = vector.shape_cast %70 : vector<16xf32> to vector<1x16xf32>
    %cst_24 = arith.constant 3.200000e+01 : f32
    %72 = vector.broadcast %cst_24 : f32 to vector<1x16xf32>
    %73 = arith.divf %71, %72 : vector<1x16xf32>
    %74 = vector.broadcast %66 : vector<1x16xf32> to vector<32x16xf32>
    %75 = arith.subf %62, %74 : vector<32x16xf32>
    %cst_25 = arith.constant 9.99999974E-6 : f32
    %76 = vector.broadcast %cst_25 : f32 to vector<1x16xf32>
    %77 = arith.addf %73, %76 : vector<1x16xf32>
    %78 = math.rsqrt %77 : vector<1x16xf32>
    %79 = vector.broadcast %78 : vector<1x16xf32> to vector<32x16xf32>
    %80 = arith.mulf %75, %79 : vector<32x16xf32>
    %81 = vector.broadcast %0 : vector<1x16xf32> to vector<32x16xf32>
    %82 = arith.mulf %80, %81 : vector<32x16xf32>
    %83 = vector.broadcast %1 : vector<1x16xf32> to vector<32x16xf32>
    %84 = arith.addf %82, %83 : vector<32x16xf32>
    %cst_26 = arith.constant 0.000000e+00 : f32
    %85 = vector.broadcast %cst_26 : f32 to vector<32x16xf32>
    %86 = arith.subf %85, %84 : vector<32x16xf32>
    %87 = math.exp %86 : vector<32x16xf32>
    %cst_27 = arith.constant 1.000000e+00 : f32
    %88 = vector.broadcast %cst_27 : f32 to vector<32x16xf32>
    %89 = arith.addf %88, %87 : vector<32x16xf32>
    %cst_28 = arith.constant 1.000000e+00 : f32
    %90 = vector.broadcast %cst_28 : f32 to vector<32x16xf32>
    %91 = arith.divf %90, %89 : vector<32x16xf32>
    %92 = vector.shape_cast %91 : vector<32x16xf32> to vector<2x16x16xf32>
    %93 = tpu.transpose %61, [0, 2, 1] : vector<2x16x16xf32> -> vector<2x16x16xf32>
    %c0_29 = arith.constant 0 : index
    %c0_30 = arith.constant 0 : index
    %c0_31 = arith.constant 0 : index
    %94 = vector.load %arg5[%c0_29, %c0_30, %c0_31] : memref<2x16x16xf32, #tpu.memory_space<vmem>>, vector<2x16x16xf32>
    tpu.vector_store %arg5[%c0_29, %c0_30, %c0_31], %93 {strides = array<i32>} : memref<2x16x16xf32, #tpu.memory_space<vmem>>, vector<2x16x16xf32>,
    %95 = tpu.transpose %92, [0, 2, 1] : vector<2x16x16xf32> -> vector<2x16x16xf32>
    %c0_32 = arith.constant 0 : index
    %c0_33 = arith.constant 0 : index
    %c0_34 = arith.constant 0 : index
    %96 = vector.load %arg6[%c0_32, %c0_33, %c0_34] : memref<2x16x16xf32, #tpu.memory_space<vmem>>, vector<2x16x16xf32>
    tpu.vector_store %arg6[%c0_32, %c0_33, %c0_34], %95 {strides = array<i32>} : memref<2x16x16xf32, #tpu.memory_space<vmem>>, vector<2x16x16xf32>,
    return
  }
}

</mosaic_0001>

<bundles_post_ra>
// kernel: sasa_forward.5
= control target key start
LH: loop header
LB: loop body
LE: loop exit
PB: predicated region body
PF: predicated region fallthrough
CT: control target
= control target key end

     0   :  { %7 = vsyncpa [#allocation3], 0  ;;  %s1273_s0 = inlined_call_operand.vmem [shape: f32[2,16,16], index: 0, kind: input, shape index: {}]   ;;  %s1274_s1 = inlined_call_operand.vmem [shape: f32[2,16,16], index: 1, kind: input, shape index: {}]   ;;  %s1275_s2 = inlined_call_operand.hbm [shape: f32[2,16,16,16], index: 2, kind: output, shape index: {}]  }
   0x1   :  { %9 = vsyncpa [#allocation3 + $0x1], 0  ;;  %s952_s9 = smov 0   ;;  %s954_s10 = smov 0  }
   0x2   :  { %s956_s11 = smov 0   ;;  %s958_s12 = smov 0  }
   0x3   :  { %s960_s13 = smov 0   ;;  %s962_s14 = smov 0  }
   0x4 LB: > { %s779_s15 = sadd.s32 4294967295, %s931_s14   ;;  %s780_s16 = sadd.s32 4294967294, %s931_s14   ;;  %s931_s14 = sphi %s962_s14, %s15_s14   ;;  %s927_s13 = sphi %s960_s13, %s1282_s13   ;;  %s923_s12 = sphi %s958_s12, %s1281_s12   ;;  %s919_s11 = sphi %s956_s11, %s1280_s11   ;;  %s915_s10 = sphi %s954_s10, %s1279_s10   ;;  %s911_s9 = sphi %s952_s9, %s1278_s9  }
   0x5   : > { %s34_s17 = sadd.s32 1, %s927_s13  ;;  %s103_s18 = sadd.s32 1, %s919_s11 }
   0x6   : > { %p36_p0 = scmp.ge.s32.totalorder %s34_s17, 2  ;;  %p113_p1 = scmp.ne.s32.totalorder %s919_s11, %s915_s10 }
   0x7   : > { %p114_p2 = scmp.eq.s32.totalorder %s779_s15, 1  ;;  %p119_p3 = scmp.ne.s32.totalorder %s915_s10, %s911_s9 }
   0x8   : > { %s1284_s17 = smov (%p36_p0, %s34_s17), 0  ;;  %p120_p5 = scmp.eq.s32.totalorder %s780_s16, 1 }
   0x9   : > { %p992_p4 = por %p114_p2, %p113_p1  ;;  %s96_s20 = ssub.s32 %s927_s13, %s1284_s17 }
   0xa   : > { %p783_p6 = scmp.ge.s32.totalorder %s931_s14, 1  ;;  %p101_p7 = scmp.eq.s32.totalorder %s96_s20, 0 }
   0xb   : > { %p999_p8 = por %p120_p5, %p119_p3  ;;  %p167_p9 = scmp.lt.s32.totalorder %s931_s14, 3 }
   0xc   : > { %s1005_s22 = scalar_select %p101_p7, %s919_s11, %s103_s18  }
   0xd   : > { %p168_p10 = pnand %p783_p6, %p167_p9 }
   0xe   : > { %p206_p11 = scmp.lt.s32.totalorder (!%p168_p10), %s923_s12, 1  ;;  %s202_s3 = sand.u32 (!%p168_p10), 1, %s915_s10  }
   0xf   : > { %171 = sbr.rel (%p168_p10) target bundleno = 219 (0xdb), region = 28  ;;  %s784_s4 = sshll.u32 (!%p168_p10), %s202_s3, 8 }
  0x10   : > { %s1121_s5 = scalar_lea.vmem (!%p168_p10), [#allocation2], %s784_s4  ;;  %s796_s6 = sshll.u32 (!%p168_p10), %s923_s12, 12 }
  0x11   : > { %s674_s7 = sshll.u32 (!%p168_p10), %s1121_s5, 4  ;;  %s1216_s16 = scalar_lea.hbm (!%p168_p10), %s1275_s2, %s796_s6  ;;  %s1218_s7 = int_to_ptr.vmem [resolvable:$true] %s674_s7 }
  0x12   : > { %s855_s18 = scalar_lea.vmem (!%p168_p10), %s1218_s7, 4096  ;;  %s934_s20 = smov (!%p168_p10), [#allocation2]  }
  0x13   : > { %p856_p12 = scmp.ne.s32.totalorder (!%p168_p10), %s1218_s7, %s855_s18 }
  0x14   : > { %v232_v0 = vlaneseq  ;;  %v933_v1 = vmov 1966171168   ;;  %s207_s23 = scalar_select %p206_p11, %s923_s12, 1  ;;  %vm622_vm0 = vcmask 130048  }
  0x15   : > { %v414_v2 = vunpack.c.l.s4 %v933_v1  ;;  %s1228_s12 = scalar_lea.sflag [#allocation3], %s202_s3  ;;  %p857_p13 = pnand %p856_p12, %p992_p4 }
  0x16   : > { %v1009_v3 = vshrl.u32 %v232_v0, 7  ;;  %s794_s24 = sshll.u32 %s207_s23, 4  ;;  %s859_s23 = sshll.u32 %s934_s20, 4  ;;  %s860_s23 = int_to_ptr.vmem [resolvable:$false] %s859_s23 }
  0x17   : > { %v415_v4 = vunpack.c.0.s8 %v414_v2  ;;  %s1018_s27 = scalar_lea.vmem %s1273_s0, %s794_s24  ;;  %s1023_s30 = scalar_lea.vmem %s1274_s1, %s794_s24 }
  0x18   : > { %v1012_v5 = vsub.s32 0, %v1009_v3  ;;  %v245_v6 = vsub.s32 1, %v1009_v3  ;;  %v230_v7 = vld [vmem:[%s1018_s27] sm:$0xff]  ;;  %v256_v11 = vsub.s32 2, %v1009_v3  ;;  %v267_v16 = vsub.s32 3, %v1009_v3  ;;  %v409_v39 = vld [vmem:[%s1023_s30 + $0x8] sm:$0xff]  ;;  %p858_p0 = pneg %p857_p13  ;;  %p862_p1 = scmp.lt.s32.totalorder %s1218_s7, %s860_s23 }
  0x19   : > { %v1030_v10 = vsub.s32 %v415_v4, %v1009_v3  ;;  %v408_v12 = vld [vmem:[%s1023_s30] sm:$0xff]  ;;  %v278_v26 = vsub.s32 4, %v1009_v3  ;;  %v289_v38 = vsub.s32 5, %v1009_v3  ;;  %v300_v44 = vsub.s32 6, %v1009_v3  ;;  %v231_v53 = vld [vmem:[%s1018_s27 + $0x8] sm:$0xff]  ;;  %s861_s24 = scalar_lea.vmem %s860_s23, 8192 }
  0x1a   : > { %v246_v8 = vrot.slane %v230_v7, %v245_v6  ;;  %v235_v9 = vrot.slane %v230_v7, %v1012_v5  ;;  %v412_v14 = vcombine.high %v408_v12, %v408_v12  ;;  %v257_v15 = vrot.slane %v230_v7, %v256_v11  ;;  %p863_p2 = scmp.lt.s32.totalorder %s861_s24, %s855_s18 }
  0x1b   : > { %v419_v13 = vrot.slane %v408_v12, %v1030_v10  ;;  %v268_v24 = vrot.slane %v230_v7, %v267_v16  ;;  %v279_v37 = vrot.slane %v230_v7, %v278_v26  ;;  %v468_v41 = vrot.slane %v409_v39, %v1030_v10 }
  0x1c   : > { %248 = vbcast.lane.b32.xlu1 %v246_v8, 256  ;;  %237 = vbcast.lane.b32.xlu0 %v235_v9, 256  ;;  %v426_v19 = vrot.slane %v412_v14, %v1030_v10  ;;  %v290_v43 = vrot.slane %v230_v7, %v289_v38  ;;  %v301_v48 = vrot.slane %v230_v7, %v300_v44  ;;  %v311_v49 = vsub.s32 7, %v1009_v3  ;;  %p864_p3 = por %p863_p2, %p862_p1 }
  0x1d   : > { %v427_v17 = vcombine.high %v419_v13, %v419_v13  ;;  %v435_v18 = vrot.slane %v419_v13, %v1030_v10  ;;  %v484_v42 = vrot.slane %v468_v41, %v1030_v10  ;;  %v476_v46 = vcombine.high %v468_v41, %v468_v41 }
  0x1e   : > { %v442_v23 = vrot.slane %v426_v19, %v1030_v10  ;;  %v428_v25 = vcombine.high %v426_v19, %v426_v19  ;;  %v312_v52 = vrot.slane %v230_v7, %v311_v49  ;;  %v461_v56 = vcombine.high %v409_v39, %v409_v39  ;;  %p865_p5 = pnand %p864_p3, %p858_p0 }
  0x1f   : > { %v449_v20 = vrot.slane %v427_v17, %v1030_v10  ;;  %v1042_v21 = vrot.slane %v435_v18, %v1012_v5  ;;  %v457_v22 = vcombine.high %v435_v18, %v435_v18  ;;  %v1078_v45 = vrot.slane %v484_v42, %v1012_v5 }
  0x20   : > { %252 = vbcast.lane.b32.xlu1 %v246_v8, 264  ;;  %241 = vbcast.lane.b32.xlu0 %v235_v9, 264  ;;  %v1055_v30 = vrot.slane %v442_v23, %v1012_v5  ;;  %v456_v31 = vrot.slane %v428_v25, %v1030_v10  ;;  %v458_v32 = vcombine.high %v442_v23, %v442_v23 }
  0x21   : > { %v1049_v27 = vrot.slane %v449_v20, %v1012_v5  ;;  %v1052_v28 = vrot.slane %v457_v22, %v1012_v5  ;;  %v459_v29 = vcombine.high %v449_v20, %v449_v20  ;;  %v498_v47 = vrot.slane %v476_v46, %v1030_v10 }
  0x22   : > { %v1062_v34 = vrot.slane %v456_v31, %v1012_v5  ;;  %v1065_v35 = vrot.slane %v458_v32, %v1012_v5  ;;  %v460_v36 = vcombine.high %v456_v31, %v456_v31  ;;  %v506_v51 = vcombine.high %v484_v42, %v484_v42 }
  0x23   : > { %v1059_v33 = vrot.slane %v459_v29, %v1012_v5  ;;  %v1083_v50 = vrot.slane %v498_v47, %v1012_v5  ;;  %v508_v55 = vcombine.high %v498_v47, %v498_v47  ;;  %v323_v57 = vrot.slane %v231_v53, %v1012_v5 }
  0x24   : > { %263 = vbcast.lane.b32.xlu1 %v257_v15, 264  ;;  %259 = vbcast.lane.b32.xlu0 %v257_v15, 256  ;;  %v1072_v40 = vrot.slane %v460_v36, %v1012_v5  ;;  %v1087_v54 = vrot.slane %v506_v51, %v1012_v5  ;;  %v475_v59 = vrot.slane %v461_v56, %v1030_v10 }
  0x25   : > { %v1091_v58 = vrot.slane %v508_v55, %v1012_v5  ;;  %v334_v61 = vrot.slane %v231_v53, %v245_v6  ;;  %v345_v1 = vrot.slane %v231_v53, %v256_v11  ;;  %v356_v6 = vrot.slane %v231_v53, %v267_v16 }
  0x26   : > { %v491_v60 = vrot.slane %v475_v59, %v1030_v10  ;;  %v477_v63 = vcombine.high %v475_v59, %v475_v59  ;;  %v367_v9 = vrot.slane %v231_v53, %v278_v26  ;;  %v378_v11 = vrot.slane %v231_v53, %v289_v38 }
  0x27   : > { %v389_v12 = vrot.slane %v231_v53, %v300_v44  ;;  %v400_v13 = vrot.slane %v231_v53, %v311_v49 }
  0x28   : > { %274 = vbcast.lane.b32.xlu1 %v268_v24, 264  ;;  %270 = vbcast.lane.b32.xlu0 %v268_v24, 256  ;;  %v1098_v62 = vrot.slane %v491_v60, %v1012_v5  ;;  %v505_v0 = vrot.slane %v477_v63, %v1030_v10  ;;  %v507_v4 = vcombine.high %v491_v60, %v491_v60 }
  0x2a   : > { %v1104_v2 = vrot.slane %v505_v0, %v1012_v5  ;;  %v1109_v7 = vrot.slane %v507_v4, %v1012_v5  ;;  %v509_v8 = vcombine.high %v505_v0, %v505_v0 }
  0x2c   : > { %285 = vbcast.lane.b32.xlu1 %v279_v37, 264  ;;  %281 = vbcast.lane.b32.xlu0 %v279_v37, 256  ;;  %v1114_v10 = vrot.slane %v509_v8, %v1012_v5 }
  0x30   : > { %296 = vbcast.lane.b32.xlu1 %v290_v43, 264  ;;  %292 = vbcast.lane.b32.xlu0 %v290_v43, 256 }
  0x34   : > { %307 = vbcast.lane.b32.xlu1 %v301_v48, 264  ;;  %303 = vbcast.lane.b32.xlu0 %v301_v48, 256 }
  0x38   : > { %318 = vbcast.lane.b32.xlu1 %v312_v52, 264  ;;  %314 = vbcast.lane.b32.xlu0 %v312_v52, 256 }
  0x3c   : > { %329 = vbcast.lane.b32.xlu1 %v323_v57, 264  ;;  %325 = vbcast.lane.b32.xlu0 %v323_v57, 256 }
  0x40   : > { %340 = vbcast.lane.b32.xlu1 %v334_v61, 264  ;;  %336 = vbcast.lane.b32.xlu0 %v334_v61, 256 }
  0x44   : > { %351 = vbcast.lane.b32.xlu1 %v345_v1, 264  ;;  %347 = vbcast.lane.b32.xlu0 %v345_v1, 256 }
  0x48   : > { %362 = vbcast.lane.b32.xlu1 %v356_v6, 264  ;;  %358 = vbcast.lane.b32.xlu0 %v356_v6, 256 }
  0x4c   : > { %373 = vbcast.lane.b32.xlu1 %v367_v9, 264  ;;  %369 = vbcast.lane.b32.xlu0 %v367_v9, 256 }
  0x50   : > { %384 = vbcast.lane.b32.xlu1 %v378_v11, 264  ;;  %380 = vbcast.lane.b32.xlu0 %v378_v11, 256 }
  0x54   : > { %395 = vbcast.lane.b32.xlu1 %v389_v12, 264  ;;  %391 = vbcast.lane.b32.xlu0 %v389_v12, 256 }
  0x58   : > { %406 = vbcast.lane.b32.xlu1 %v400_v13, 264  ;;  %402 = vbcast.lane.b32.xlu0 %v400_v13, 256 }
  0x8e   : > { %v249_v3 = vpop.permute.xlu1 %248  ;;  %v238_v14 = vpop.permute.xlu0 %237 }
  0x8f   : > { %v592_v5 = vmul.f32 %v1049_v27, %v249_v3  ;;  %v590_v15 = vmul.f32 %v1042_v21, %v238_v14 }
  0x91   : > { %625 = vst.msk [vmem:[%s1121_s5 + $0x10] sm:$0xff] %vm622_vm0, %v592_v5  ;;  %623 = vst.msk [vmem:[%s1121_s5] sm:$0xff] %vm622_vm0, %v590_v15 }
  0x92   : > { %v253_v16 = vpop.permute.xlu1 %252  ;;  %v242_v17 = vpop.permute.xlu0 %241 }
  0x93   : > { %v593_v18 = vmul.f32 %v1049_v27, %v253_v16  ;;  %v591_v19 = vmul.f32 %v1042_v21, %v242_v17 }
  0x95   : > { %626 = vst.msk [vmem:[%s1121_s5 + $0x18] sm:$0xff] %vm622_vm0, %v593_v18  ;;  %624 = vst.msk [vmem:[%s1121_s5 + $0x8] sm:$0xff] %vm622_vm0, %v591_v19 }
  0x96   : > { %v264_v20 = vpop.permute.xlu1 %263  ;;  %v260_v22 = vpop.permute.xlu0 %259 }
  0x97   : > { %v595_v23 = vmul.f32 %v1052_v28, %v264_v20  ;;  %v594_v24 = vmul.f32 %v1052_v28, %v260_v22 }
  0x99   : > { %628 = vst.msk [vmem:[%s1121_s5 + $0x28] sm:$0xff] %vm622_vm0, %v595_v23  ;;  %627 = vst.msk [vmem:[%s1121_s5 + $0x20] sm:$0xff] %vm622_vm0, %v594_v24 }
  0x9a   : > { %v275_v25 = vpop.permute.xlu1 %274  ;;  %v271_v26 = vpop.permute.xlu0 %270 }
  0x9b   : > { %v597_v21 = vmul.f32 %v1059_v33, %v275_v25  ;;  %v596_v27 = vmul.f32 %v1059_v33, %v271_v26 }
  0x9d   : > { %630 = vst.msk [vmem:[%s1121_s5 + $0x38] sm:$0xff] %vm622_vm0, %v597_v21  ;;  %629 = vst.msk [vmem:[%s1121_s5 + $0x30] sm:$0xff] %vm622_vm0, %v596_v27 }
  0x9e   : > { %v286_v29 = vpop.permute.xlu1 %285  ;;  %v282_v31 = vpop.permute.xlu0 %281 }
  0x9f   : > { %v599_v28 = vmul.f32 %v1055_v30, %v286_v29  ;;  %v598_v32 = vmul.f32 %v1055_v30, %v282_v31 }
  0xa1   : > { %632 = vst.msk [vmem:[%s1121_s5 + $0x48] sm:$0xff] %vm622_vm0, %v599_v28  ;;  %631 = vst.msk [vmem:[%s1121_s5 + $0x40] sm:$0xff] %vm622_vm0, %v598_v32 }
  0xa2   : > { %v297_v36 = vpop.permute.xlu1 %296  ;;  %v293_v37 = vpop.permute.xlu0 %292 }
  0xa3   : > { %v601_v33 = vmul.f32 %v1062_v34, %v297_v36  ;;  %v600_v38 = vmul.f32 %v1062_v34, %v293_v37 }
  0xa5   : > { %634 = vst.msk [vmem:[%s1121_s5 + $0x58] sm:$0xff] %vm622_vm0, %v601_v33  ;;  %633 = vst.msk [vmem:[%s1121_s5 + $0x50] sm:$0xff] %vm622_vm0, %v600_v38 }
  0xa6   : > { %v308_v39 = vpop.permute.xlu1 %307  ;;  %v304_v41 = vpop.permute.xlu0 %303 }
  0xa7   : > { %v603_v30 = vmul.f32 %v1065_v35, %v308_v39  ;;  %v602_v42 = vmul.f32 %v1065_v35, %v304_v41 }
  0xa9   : > { %636 = vst.msk [vmem:[%s1121_s5 + $0x68] sm:$0xff] %vm622_vm0, %v603_v30  ;;  %635 = vst.msk [vmem:[%s1121_s5 + $0x60] sm:$0xff] %vm622_vm0, %v602_v42 }
  0xaa   : > { %v319_v43 = vpop.permute.xlu1 %318  ;;  %v315_v44 = vpop.permute.xlu0 %314 }
  0xab   : > { %v605_v34 = vmul.f32 %v1072_v40, %v319_v43  ;;  %v604_v46 = vmul.f32 %v1072_v40, %v315_v44 }
  0xad   : > { %638 = vst.msk [vmem:[%s1121_s5 + $0x78] sm:$0xff] %vm622_vm0, %v605_v34  ;;  %637 = vst.msk [vmem:[%s1121_s5 + $0x70] sm:$0xff] %vm622_vm0, %v604_v46 }
  0xae   : > { %v330_v47 = vpop.permute.xlu1 %329  ;;  %v326_v48 = vpop.permute.xlu0 %325 }
  0xaf   : > { %v607_v35 = vmul.f32 %v1078_v45, %v330_v47  ;;  %v606_v49 = vmul.f32 %v1078_v45, %v326_v48 }
  0xb1   : > { %640 = vst.msk [vmem:[%s1121_s5 + $0x88] sm:$0xff] %vm622_vm0, %v607_v35  ;;  %639 = vst.msk [vmem:[%s1121_s5 + $0x80] sm:$0xff] %vm622_vm0, %v606_v49 }
  0xb2   : > { %v341_v51 = vpop.permute.xlu1 %340  ;;  %v337_v52 = vpop.permute.xlu0 %336 }
  0xb3   : > { %v609_v40 = vmul.f32 %v1083_v50, %v341_v51  ;;  %v608_v53 = vmul.f32 %v1083_v50, %v337_v52 }
  0xb5   : > { %642 = vst.msk [vmem:[%s1121_s5 + $0x98] sm:$0xff] %vm622_vm0, %v609_v40  ;;  %641 = vst.msk [vmem:[%s1121_s5 + $0x90] sm:$0xff] %vm622_vm0, %v608_v53 }
  0xb6   : > { %v352_v55 = vpop.permute.xlu1 %351  ;;  %v348_v56 = vpop.permute.xlu0 %347 }
  0xb7   : > { %v611_v45 = vmul.f32 %v1087_v54, %v352_v55  ;;  %v610_v57 = vmul.f32 %v1087_v54, %v348_v56 }
  0xb9   : > { %644 = vst.msk [vmem:[%s1121_s5 + $0xa8] sm:$0xff] %vm622_vm0, %v611_v45  ;;  %643 = vst.msk [vmem:[%s1121_s5 + $0xa0] sm:$0xff] %vm622_vm0, %v610_v57 }
  0xba   : > { %v363_v59 = vpop.permute.xlu1 %362  ;;  %v359_v60 = vpop.permute.xlu0 %358 }
  0xbb   : > { %v613_v50 = vmul.f32 %v1091_v58, %v363_v59  ;;  %v612_v61 = vmul.f32 %v1091_v58, %v359_v60 }
  0xbd   : > { %646 = vst.msk [vmem:[%s1121_s5 + $0xb8] sm:$0xff] %vm622_vm0, %v613_v50  ;;  %645 = vst.msk [vmem:[%s1121_s5 + $0xb0] sm:$0xff] %vm622_vm0, %v612_v61 }
  0xbe   : > { %v374_v63 = vpop.permute.xlu1 %373  ;;  %v370_v0 = vpop.permute.xlu0 %369 }
  0xbf   : > { %v615_v54 = vmul.f32 %v1098_v62, %v374_v63  ;;  %v614_v1 = vmul.f32 %v1098_v62, %v370_v0 }
  0xc1   : > { %648 = vst.msk [vmem:[%s1121_s5 + $0xc8] sm:$0xff] %vm622_vm0, %v615_v54  ;;  %647 = vst.msk [vmem:[%s1121_s5 + $0xc0] sm:$0xff] %vm622_vm0, %v614_v1 }
  0xc2   : > { %v385_v4 = vpop.permute.xlu1 %384  ;;  %v381_v58 = vpop.permute.xlu0 %380 }
  0xc3   : > { %v617_v6 = vmul.f32 %v1104_v2, %v385_v4  ;;  %v616_v8 = vmul.f32 %v1104_v2, %v381_v58 }
  0xc5   : > { %650 = vst.msk [vmem:[%s1121_s5 + $0xd8] sm:$0xff] %vm622_vm0, %v617_v6  ;;  %649 = vst.msk [vmem:[%s1121_s5 + $0xd0] sm:$0xff] %vm622_vm0, %v616_v8 }
  0xc6   : > { %v396_v9 = vpop.permute.xlu1 %395  ;;  %v392_v62 = vpop.permute.xlu0 %391 }
  0xc7   : > { %v619_v11 = vmul.f32 %v1109_v7, %v396_v9  ;;  %v618_v12 = vmul.f32 %v1109_v7, %v392_v62 }
  0xc9   : > { %652 = vst.msk [vmem:[%s1121_s5 + $0xe8] sm:$0xff] %vm622_vm0, %v619_v11  ;;  %651 = vst.msk [vmem:[%s1121_s5 + $0xe0] sm:$0xff] %vm622_vm0, %v618_v12 }
  0xca   : > { %v407_v2 = vpop.permute.xlu1 %406  ;;  %v403_v13 = vpop.permute.xlu0 %402 }
  0xcb   : > { %v621_v7 = vmul.f32 %v1114_v10, %v407_v2  ;;  %v620_v3 = vmul.f32 %v1114_v10, %v403_v13 }
  0xcd   : > { %654 = vst.msk [vmem:[%s1121_s5 + $0xf8] sm:$0xff] %vm622_vm0, %v621_v7  ;;  %653 = vst.msk [vmem:[%s1121_s5 + $0xf0] sm:$0xff] %vm622_vm0, %v620_v3 }
  0xce   : > { %868 = shalt.err (!%p865_p5)
}
  0xcf   : > { %s869_s25 = scalar_lea.hbm %s1216_s16, 4096  ;;  %s873_s28 = scalar_lea.hbm %s1275_s2, 8192 }
  0xd0   : > { %p870_p6 = scmp.ne.s32.totalorder %s1216_s16, %s869_s25  ;;  %p874_p10 = scmp.lt.s32.totalorder %s1216_s16, %s1275_s2 }
  0xd1   : > { %p875_p11 = scmp.lt.s32.totalorder %s873_s28, %s869_s25 }
  0xd2   : > { %p871_p7 = pnand %p870_p6, %p992_p4 }
  0xd3   : > { %p876_p12 = por %p875_p11, %p874_p10 }
  0xd4   : > { %p872_p9 = pneg %p871_p7 }
  0xd6   : > { %p877_p13 = pnand %p876_p12, %p872_p9 }
  0xd8   : > { %880 = shalt.err (!%p877_p13)
}
  0xd9   : > { %s935_s3 = smov 128   ;;  %s936_s4 = smov 8  }
  0xda   : > { %797 = dma.vmem_to_hbm [thread:$0]  (%p992_p4), %s1218_s7, 4096, %s1216_s16, %s1228_s12, %s935_s3, %s935_s3, %s936_s4  }
  0xdb PF: > { %p803_p0 = scmp.ge.s32.totalorder %s931_s14, 2  ;;  %s689_s5 = sand.u32 1, %s911_s9  }
  0xdc   : > { %s690_s6 = scalar_lea.sflag [#allocation3], %s689_s5 }
  0xdd   : > { %p800_p1 = pnand %p803_p0, %p999_p8 }
  0xdf   : > { %p801_p2 = pneg %p800_p1 }
  0xe1   : > { %906 = dma.done.wait (%p801_p2), %s690_s6, 4096  }
  0xe2   : > { %908 = vsyncadd (%p801_p2), %s690_s6, 4294963200  ;;  %s15_s14 = sadd.s32 1, %s931_s14   ;;  %s1278_s9 = smov %s915_s10 }
  0xe3   : > { %p12_p3 = scmp.ge.s32.totalorder %s15_s14, 4   ;;  %s1279_s10 = smov %s919_s11 }
  0xe4   : > { %s1280_s11 = smov %s1005_s22  ;;  %s1281_s12 = smov %s927_s13 }
  0xe5   : > { %s1282_s13 = smov %s1284_s17  ;;  %14 = sbr.rel (!%p12_p3) target bundleno = 4 (0x4), region = 66 }
  0xea   :  { %695 = vsyncpa [#allocation3], 1 }
  0xeb   :  { %697 = vsyncpa [#allocation3 + $0x1], 1 }

// kernel: sasa_forward.3
= control target key start
LH: loop header
LB: loop body
LE: loop exit
PB: predicated region body
PF: predicated region fallthrough
CT: control target
= control target key end

     0   :  { %s1009_s9 = smov 0   ;;  %s1011_s10 = smov 0   ;;  %s1318_s0 = inlined_call_operand.vmem [shape: f32[2,16,16,16], index: 0, kind: input, shape index: {}]   ;;  %s1319_s1 = inlined_call_operand.vmem [shape: f32[2,16,16], index: 1, kind: output, shape index: {0}]   ;;  %s1320_s2 = inlined_call_operand.vmem [shape: f32[2,16,16], index: 2, kind: output, shape index: {1}]  }
   0x1   :  { %s1013_s11 = smov 0  }
   0x2 LB: > { %s32_s12 = sadd.s32 1, %s987_s10  ;;  %p932_p0 = scmp.ge.s32.totalorder %s991_s11, 1  ;;  %s991_s11 = sphi %s1013_s11, %s13_s11   ;;  %s987_s10 = sphi %s1011_s10, %s1322_s10   ;;  %s983_s9 = sphi %s1009_s9, %s1321_s9  }
   0x3   : > { %p34_p1 = scmp.ge.s32.totalorder %s32_s12, 2  ;;  %p155_p2 = scmp.lt.s32.totalorder %s991_s11, 3 }
   0x5   : > { %s1324_s12 = smov (%p34_p1, %s32_s12), 0  ;;  %p156_p3 = pnand %p932_p0, %p155_p2 }
   0x6   : > { %p204_p4 = scmp.lt.s32.totalorder (!%p156_p3), %s983_s9, 1 }
   0x7   : > { %159 = sbr.rel (%p156_p3) target bundleno = 222 (0xde), region = 24 }
   0xc   : > { %s1326_s9 = smov (!%p204_p4, %s983_s9), 1  ;;  %vm273_vm0 = vcmask 130048   ;;  %v993_v3 = vmov 0.0   ;;  %vm582_vm1 = vcmask 1041409   ;;  %vm584_vm2 = vcmask 1042434  }
   0xd   : > { %s941_s13 = sshll.u32 %s1326_s9, 8  ;;  %s942_s14 = sshll.u32 %s1326_s9, 4  ;;  %vm586_vm3 = vcmask 1043459   ;;  %vm588_vm4 = vcmask 1044484   ;;  %vm590_vm5 = vcmask 1045509   ;;  %vm592_vm6 = vcmask 1046534  }
   0xe   : > { %s1034_s17 = scalar_lea.vmem %s1318_s0, %s941_s13  ;;  %s1041_s20 = scalar_lea.vmem %s1320_s2, %s942_s14  ;;  %vm594_vm7 = vcmask 1047559   ;;  %vm445_vm8 = vcmask 130112  }
   0xf   : > { %v243_v0 = vld [vmem:[%s1034_s17 + $0x10] sm:$0xff]  ;;  %v241_v1 = vld [vmem:[%s1034_s17] sm:$0xff]  ;;  %v244_v2 = vld [vmem:[%s1034_s17 + $0x18] sm:$0xff]  ;;  %611 = vst.msk [vmem:[%s1041_s20] sm:$0xff] %vm273_vm0, %v993_v3  ;;  %s229_s23 = scalar_lea.vmem %s1319_s1, %s942_s14 }
  0x10   : > { %612 = vst.msk [vmem:[%s1041_s20 + $0x8] sm:$0xff] %vm273_vm0, %v993_v3  ;;  %v280_v4 = vsel %vm273_vm0, %v243_v0, 0.0  ;;  %v274_v5 = vsel %vm273_vm0, %v241_v1, 0.0  ;;  %v283_v6 = vsel %vm273_vm0, %v244_v2, 0.0  ;;  %v242_v7 = vld [vmem:[%s1034_s17 + $0x8] sm:$0xff]  ;;  %v257_v9 = vld [vmem:[%s1034_s17 + $0x80] sm:$0xff] }
  0x11   : > { %v258_v8 = vld [vmem:[%s1034_s17 + $0x88] sm:$0xff]  ;;  %281 = vadd.xlane.f32.xlu1 %v280_v4  ;;  %275 = vadd.xlane.f32.xlu0 %v274_v5  ;;  %v622_v10 = vadd.f32 %v283_v6, %v280_v4  ;;  %v277_v11 = vsel %vm273_vm0, %v242_v7, 0.0  ;;  %v322_v13 = vsel %vm273_vm0, %v257_v9, 0.0  ;;  %v260_v14 = vld [vmem:[%s1034_s17 + $0x98] sm:$0xff]  ;;  %v259_v15 = vld [vmem:[%s1034_s17 + $0x90] sm:$0xff] }
  0x12   : > { %v325_v12 = vsel %vm273_vm0, %v258_v8, 0.0  ;;  %v246_v16 = vld [vmem:[%s1034_s17 + $0x28] sm:$0xff]  ;;  %v615_v17 = vadd.f32 %v277_v11, %v274_v5  ;;  %v331_v19 = vsel %vm273_vm0, %v260_v14, 0.0  ;;  %v328_v20 = vsel %vm273_vm0, %v259_v15, 0.0  ;;  %v245_v21 = vld [vmem:[%s1034_s17 + $0x20] sm:$0xff]  ;;  %v248_v28 = vld [vmem:[%s1034_s17 + $0x38] sm:$0xff] }
  0x13   : > { %v671_v18 = vadd.f32 %v325_v12, %v322_v13  ;;  %v262_v22 = vld [vmem:[%s1034_s17 + $0xa8] sm:$0xff]  ;;  %v261_v23 = vld [vmem:[%s1034_s17 + $0xa0] sm:$0xff]  ;;  %v623_v24 = vrot.slane %v622_v10, 4  ;;  %v678_v25 = vadd.f32 %v331_v19, %v328_v20  ;;  %v1068_v26 = vsel %vm273_vm0, %v246_v16, 0.0  ;;  %v247_v33 = vld [vmem:[%s1034_s17 + $0x30] sm:$0xff] }
  0x14   : > { %v1071_v27 = vsel %vm273_vm0, %v245_v21, 0.0  ;;  %v616_v29 = vrot.slane %v615_v17, 4  ;;  %v1077_v32 = vsel %vm273_vm0, %v262_v22, 0.0  ;;  %v264_v34 = vld [vmem:[%s1034_s17 + $0xb8] sm:$0xff]  ;;  %v1082_v37 = vsel %vm273_vm0, %v261_v23, 0.0  ;;  %v263_v43 = vld [vmem:[%s1034_s17 + $0xb0] sm:$0xff] }
  0x15   : > { %v672_v30 = vrot.slane %v671_v18, 4  ;;  %v629_v31 = vadd.f32 %v1068_v26, %v1071_v27  ;;  %284 = vadd.xlane.f32.xlu1 %v283_v6  ;;  %v624_v35 = vadd.f32 %v623_v24, %v622_v10  ;;  %278 = vadd.xlane.f32.xlu0 %v277_v11  ;;  %v679_v36 = vrot.slane %v678_v25, 4  ;;  %v250_v4 = vld [vmem:[%s1034_s17 + $0x48] sm:$0xff]  ;;  %v249_v9 = vld [vmem:[%s1034_s17 + $0x40] sm:$0xff] }
  0x16   : > { %v1085_v38 = vsel %vm273_vm0, %v248_v28, 0.0  ;;  %v617_v39 = vadd.f32 %v616_v29, %v615_v17  ;;  %v685_v42 = vadd.f32 %v1077_v32, %v1082_v37  ;;  %v1091_v46 = vsel %vm273_vm0, %v247_v33, 0.0  ;;  %v265_v21 = vld [vmem:[%s1034_s17 + $0xc0] sm:$0xff] }
  0x17   : > { %v673_v40 = vadd.f32 %v672_v30, %v671_v18  ;;  %v630_v41 = vrot.slane %v629_v31, 4  ;;  %v625_v44 = vrot.slane %v624_v35, 2  ;;  %v680_v45 = vadd.f32 %v679_v36, %v678_v25  ;;  %v266_v18 = vld [vmem:[%s1034_s17 + $0xc8] sm:$0xff]  ;;  %v252_v30 = vld [vmem:[%s1034_s17 + $0x58] sm:$0xff] }
  0x18   : > { %v1094_v47 = vsel %vm273_vm0, %v264_v34, 0.0  ;;  %v618_v48 = vrot.slane %v617_v39, 2  ;;  %v686_v51 = vrot.slane %v685_v42, 4  ;;  %v636_v54 = vadd.f32 %v1085_v38, %v1091_v46 }
  0x19   : > { %v674_v49 = vrot.slane %v673_v40, 2  ;;  %v631_v50 = vadd.f32 %v630_v41, %v629_v31  ;;  %v626_v52 = vadd.f32 %v625_v44, %v624_v35  ;;  %326 = vadd.xlane.f32.xlu1 %v325_v12  ;;  %323 = vadd.xlane.f32.xlu0 %v322_v13  ;;  %v681_v53 = vrot.slane %v680_v45, 2  ;;  %v267_v41 = vld [vmem:[%s1034_s17 + $0xd0] sm:$0xff] }
  0x1a   : > { %v1099_v55 = vsel %vm273_vm0, %v263_v43, 0.0  ;;  %v619_v56 = vadd.f32 %v618_v48, %v617_v39  ;;  %v687_v59 = vadd.f32 %v686_v51, %v685_v42  ;;  %v637_v62 = vrot.slane %v636_v54, 4  ;;  %v253_v48 = vld [vmem:[%s1034_s17 + $0x60] sm:$0xff] }
  0x1b   : > { %v675_v57 = vadd.f32 %v674_v49, %v673_v40  ;;  %v632_v58 = vrot.slane %v631_v50, 2  ;;  %v627_v60 = vrot.slane %v626_v52, 1  ;;  %v682_v61 = vadd.f32 %v681_v53, %v680_v45  ;;  %v268_v40 = vld [vmem:[%s1034_s17 + $0xd8] sm:$0xff]  ;;  %v254_v45 = vld [vmem:[%s1034_s17 + $0x68] sm:$0xff] }
  0x1c   : > { %v692_v63 = vadd.f32 %v1094_v47, %v1099_v55  ;;  %v620_v0 = vrot.slane %v619_v56, 1  ;;  %v688_v3 = vrot.slane %v687_v59, 2  ;;  %v638_v7 = vadd.f32 %v637_v62, %v636_v54 }
  0x1d   : > { %v676_v1 = vrot.slane %v675_v57, 1  ;;  %v633_v2 = vadd.f32 %v632_v58, %v631_v50  ;;  %v628_v5 = vadd.f32 %v627_v60, %v626_v52  ;;  %332 = vadd.xlane.f32.xlu1 %v331_v19  ;;  %v683_v6 = vrot.slane %v682_v61, 1  ;;  %329 = vadd.xlane.f32.xlu0 %v328_v20 }
  0x1e   : > { %v693_v8 = vrot.slane %v692_v63, 4  ;;  %v621_v10 = vadd.f32 %v620_v0, %v619_v56  ;;  %v689_v13 = vadd.f32 %v688_v3, %v687_v59  ;;  %v639_v15 = vrot.slane %v638_v7, 2  ;;  %v255_v3 = vld [vmem:[%s1034_s17 + $0x70] sm:$0xff] }
  0x1f   : > { %v677_v11 = vadd.f32 %v676_v1, %v675_v57  ;;  %v634_v12 = vrot.slane %v633_v2, 1  ;;  %v684_v14 = vadd.f32 %v683_v6, %v682_v61  ;;  %v1106_v17 = vsel %vm273_vm0, %v250_v4, 0.0  ;;  %v269_v57 = vld [vmem:[%s1034_s17 + $0xe0] sm:$0xff] }
  0x20   : > { %v694_v16 = vadd.f32 %v693_v8, %v692_v63  ;;  %v743_v19 = vsel %vm582_vm1, %v628_v5, %v621_v10  ;;  %v690_v22 = vrot.slane %v689_v13, 1  ;;  %v1112_v23 = vsel %vm273_vm0, %v249_v9, 0.0 }
  0x21   : > { %v635_v20 = vadd.f32 %v634_v12, %v633_v2  ;;  %v750_v24 = vsel %vm582_vm1, %v684_v14, %v677_v11  ;;  %290 = vadd.xlane.f32.xlu1 %v1068_v26  ;;  %287 = vadd.xlane.f32.xlu0 %v1071_v27  ;;  %v640_v25 = vadd.f32 %v639_v15, %v638_v7  ;;  %v1121_v33 = vsel %vm273_vm0, %v266_v18, 0.0  ;;  %v251_v26 = vld [vmem:[%s1034_s17 + $0x50] sm:$0xff]  ;;  %v256_v2 = vld [vmem:[%s1034_s17 + $0x78] sm:$0xff] }
  0x22   : > { %v695_v28 = vrot.slane %v694_v16, 2  ;;  %v643_v29 = vadd.f32 %v1106_v17, %v1112_v23  ;;  %v691_v31 = vadd.f32 %v690_v22, %v689_v13  ;;  %v1124_v34 = vsel %vm273_vm0, %v265_v21, 0.0  ;;  %v272_v21 = vld [vmem:[%s1034_s17 + $0xf8] sm:$0xff] }
  0x23   : > { %v641_v35 = vrot.slane %v640_v25, 1  ;;  %v699_v39 = vadd.f32 %v1121_v33, %v1124_v34  ;;  %v744_v42 = vsel %vm584_vm2, %v635_v20, %v743_v19  ;;  %v1136_v44 = vsel %vm273_vm0, %v252_v30, 0.0  ;;  %v271_v19 = vld [vmem:[%s1034_s17 + $0xf0] sm:$0xff] }
  0x24   : > { %v696_v36 = vadd.f32 %v695_v28, %v694_v16  ;;  %v644_v27 = vrot.slane %v643_v29, 4  ;;  %v1133_v43 = vsel %vm584_vm2, %v691_v31, %v750_v24  ;;  %v1143_v52 = vsel %vm273_vm0, %v251_v26, 0.0 }
  0x25   : > { %338 = vadd.xlane.f32.xlu1 %v1077_v32  ;;  %335 = vadd.xlane.f32.xlu0 %v1082_v37  ;;  %v642_v49 = vadd.f32 %v641_v35, %v640_v25  ;;  %v700_v51 = vrot.slane %v699_v39, 4  ;;  %v650_v54 = vadd.f32 %v1136_v44, %v1143_v52  ;;  %v1148_v56 = vsel %vm273_vm0, %v268_v40, 0.0  ;;  %v270_v37 = vld [vmem:[%s1034_s17 + $0xe8] sm:$0xff] }
  0x26   : > { %v645_v50 = vadd.f32 %v644_v27, %v643_v29  ;;  %v697_v53 = vrot.slane %v696_v36, 1  ;;  %v1151_v32 = vsel %vm273_vm0, %v267_v41, 0.0  ;;  %v1156_v60 = vsel %vm273_vm0, %v254_v45, 0.0 }
  0x27   : > { %v701_v59 = vadd.f32 %v700_v51, %v699_v39  ;;  %v1159_v61 = vsel %vm273_vm0, %v253_v48, 0.0  ;;  %v745_v62 = vsel %vm586_vm3, %v642_v49, %v744_v42  ;;  %v651_v63 = vrot.slane %v650_v54, 4 }
  0x28   : > { %v646_v58 = vrot.slane %v645_v50, 2  ;;  %v706_v0 = vadd.f32 %v1148_v56, %v1151_v32  ;;  %v657_v1 = vadd.f32 %v1156_v60, %v1159_v61  ;;  %v1171_v6 = vsel %vm273_vm0, %v270_v37, 0.0 }
  0x29   : > { %296 = vadd.xlane.f32.xlu1 %v1085_v38  ;;  %293 = vadd.xlane.f32.xlu0 %v1091_v46  ;;  %v702_v5 = vrot.slane %v701_v59, 2  ;;  %v1174_v7 = vsel %vm273_vm0, %v269_v57, 0.0  ;;  %v652_v8 = vadd.f32 %v651_v63, %v650_v54  ;;  %v1179_v46 = vsel %vm273_vm0, %v256_v2, 0.0 }
  0x2a   : > { %v647_v4 = vadd.f32 %v646_v58, %v645_v50  ;;  %v707_v9 = vrot.slane %v706_v0, 4  ;;  %v658_v10 = vrot.slane %v657_v1, 4  ;;  %v713_v11 = vadd.f32 %v1171_v6, %v1174_v7 }
  0x2b   : > { %v703_v38 = vadd.f32 %v702_v5, %v701_v59  ;;  %v1182_v13 = vsel %vm273_vm0, %v255_v3, 0.0  ;;  %v653_v14 = vrot.slane %v652_v8, 2  ;;  %v698_v20 = vadd.f32 %v697_v53, %v696_v36 }
  0x2c   : > { %v648_v12 = vrot.slane %v647_v4, 1  ;;  %v708_v15 = vadd.f32 %v707_v9, %v706_v0  ;;  %v659_v16 = vadd.f32 %v658_v10, %v657_v1  ;;  %v714_v18 = vrot.slane %v713_v11, 4 }
  0x2d   : > { %344 = vadd.xlane.f32.xlu1 %v1094_v47  ;;  %341 = vadd.xlane.f32.xlu0 %v1099_v55  ;;  %v704_v24 = vrot.slane %v703_v38, 1  ;;  %v664_v25 = vadd.f32 %v1179_v46, %v1182_v13  ;;  %v654_v28 = vadd.f32 %v653_v14, %v652_v8  ;;  %v1192_v27 = vsel %vm273_vm0, %v272_v21, 0.0 }
  0x2e   : > { %v649_v22 = vadd.f32 %v648_v12, %v647_v4  ;;  %v709_v29 = vrot.slane %v708_v15, 2  ;;  %v660_v30 = vrot.slane %v659_v16, 2  ;;  %v715_v31 = vadd.f32 %v714_v18, %v713_v11 }
  0x2f   : > { %v665_v35 = vrot.slane %v664_v25, 4  ;;  %v1195_v47 = vsel %vm273_vm0, %v271_v19, 0.0  ;;  %v655_v36 = vrot.slane %v654_v28, 1  ;;  %v705_v41 = vadd.f32 %v704_v24, %v703_v38 }
  0x30   : > { %v746_v26 = vsel %vm588_vm4, %v649_v22, %v745_v62  ;;  %v710_v55 = vadd.f32 %v709_v29, %v708_v15  ;;  %v661_v39 = vadd.f32 %v660_v30, %v659_v16  ;;  %v716_v40 = vrot.slane %v715_v31, 2 }
  0x31   : > { %302 = vadd.xlane.f32.xlu1 %v1106_v17  ;;  %299 = vadd.xlane.f32.xlu0 %v1112_v23  ;;  %v666_v42 = vadd.f32 %v665_v35, %v664_v25  ;;  %v720_v45 = vadd.f32 %v1192_v27, %v1195_v47  ;;  %v656_v48 = vadd.f32 %v655_v36, %v654_v28  ;;  %v434_v25 = vlaneseq }
  0x32   : > { %v711_v49 = vrot.slane %v710_v55, 1  ;;  %v662_v50 = vrot.slane %v661_v39, 1  ;;  %v717_v51 = vadd.f32 %v716_v40, %v715_v31  ;;  %v752_v53 = vsel %vm586_vm3, %v698_v20, %v1133_v43 }
  0x33   : > { %v667_v54 = vrot.slane %v666_v42, 2  ;;  %v721_v37 = vrot.slane %v720_v45, 4  ;;  %v747_v57 = vsel %vm590_vm5, %v656_v48, %v746_v26  ;;  %v753_v63 = vsel %vm588_vm4, %v705_v41, %v752_v53 }
  0x34   : > { %v663_v17 = vadd.f32 %v662_v50, %v661_v39  ;;  %v718_v58 = vrot.slane %v717_v51, 1  ;;  %v712_v23 = vadd.f32 %v711_v49, %v710_v55  ;;  %v435_v30 = vand.u32 127, %v434_v25 }
  0x35   : > { %350 = vadd.xlane.f32.xlu1 %v1121_v33  ;;  %347 = vadd.xlane.f32.xlu0 %v1124_v34  ;;  %v668_v59 = vadd.f32 %v667_v54, %v666_v42  ;;  %v722_v62 = vadd.f32 %v721_v37, %v720_v45  ;;  %v613_v34 = vld [vmem:[%s1041_s20] sm:$0xff] }
  0x36   : > { %v748_v1 = vsel %vm592_vm6, %v663_v17, %v747_v57  ;;  %v719_v2 = vadd.f32 %v718_v58, %v717_v51  ;;  %v754_v33 = vsel %vm590_vm5, %v712_v23, %v753_v63  ;;  %v440_v31 = vadd.s32 4294967288, %v435_v30 }
  0x37   : > { %v669_v0 = vrot.slane %v668_v59, 1  ;;  %v723_v43 = vrot.slane %v722_v62, 2 }
  0x38   : > { %v755_v9 = vsel %vm592_vm6, %v719_v2, %v754_v33 }
  0x39   : > { %308 = vadd.xlane.f32.xlu1 %v1136_v44  ;;  %305 = vadd.xlane.f32.xlu0 %v1143_v52  ;;  %v670_v3 = vadd.f32 %v669_v0, %v668_v59  ;;  %v724_v4 = vadd.f32 %v723_v43, %v722_v62  ;;  %v614_v44 = vld [vmem:[%s1041_s20 + $0x8] sm:$0xff] }
  0x3b   : > { %v749_v5 = vsel %vm594_vm7, %v670_v3, %v748_v1  ;;  %v725_v8 = vrot.slane %v724_v4, 1 }
  0x3c   : > { %v759_v10 = vadd.f32 %v749_v5, %v613_v34 }
  0x3d   : > { %356 = vadd.xlane.f32.xlu1 %v1148_v56  ;;  %353 = vadd.xlane.f32.xlu0 %v1151_v32  ;;  %v726_v52 = vadd.f32 %v725_v8, %v724_v4 }
  0x3e   : > { %761 = vst.msk [vmem:[%s1041_s20] sm:$0xff] %vm273_vm0, %v759_v10 }
  0x3f   : > { %v756_v11 = vsel %vm594_vm7, %v726_v52, %v755_v9 }
  0x40   : > { %v760_v12 = vadd.f32 %v756_v11, %v614_v44 }
  0x41   : > { %314 = vadd.xlane.f32.xlu1 %v1156_v60  ;;  %311 = vadd.xlane.f32.xlu0 %v1159_v61 }
  0x42   : > { %762 = vst.msk [vmem:[%s1041_s20 + $0x8] sm:$0xff] %vm273_vm0, %v760_v12 }
  0x45   : > { %362 = vadd.xlane.f32.xlu1 %v1171_v6  ;;  %359 = vadd.xlane.f32.xlu0 %v1174_v7  ;;  %v766_v56 = vld [vmem:[%s1041_s20] sm:$0xff] }
  0x46   : > { %v768_v32 = vmul.f32 0.0625, %v766_v56 }
  0x48   : > { %770 = vst.msk [vmem:[%s1041_s20] sm:$0xff] %vm273_vm0, %v768_v32 }
  0x49   : > { %320 = vadd.xlane.f32.xlu1 %v1179_v46  ;;  %317 = vadd.xlane.f32.xlu0 %v1182_v13  ;;  %v767_v38 = vld [vmem:[%s1041_s20 + $0x8] sm:$0xff] }
  0x4a   : > { %v769_v14 = vmul.f32 0.0625, %v767_v38 }
  0x4c   : > { %771 = vst.msk [vmem:[%s1041_s20 + $0x8] sm:$0xff] %vm273_vm0, %v769_v14 }
  0x4d   : > { %368 = vadd.xlane.f32.xlu1 %v1192_v27  ;;  %365 = vadd.xlane.f32.xlu0 %v1195_v47  ;;  %v437_v27 = vshrl.u32 %v434_v25, 7 }
  0x4f   : > { %v1236_v47 = vsub.s32 %v440_v31, %v437_v27  ;;  %v1238_v45 = vsub.s32 %v435_v30, %v437_v27 }
  0x9a   : > { %v282_v60 = vpop.xlane.xlu1 %281  ;;  %v276_v61 = vpop.xlane.xlu0 %275 }
  0x9b   : > { %v372_v50 = vmul.f32 0.0625, %v282_v60  ;;  %v370_v51 = vmul.f32 0.0625, %v276_v61 }
  0x9d   : > { %v450_v0 = vrot.slane %v372_v50, %v1238_v45  ;;  %v439_v43 = vrot.slane %v370_v51, %v1238_v45 }
  0x9e   : > { %v285_v6 = vpop.xlane.xlu1 %284  ;;  %v279_v7 = vpop.xlane.xlu0 %278 }
  0x9f   : > { %v373_v39 = vmul.f32 0.0625, %v285_v6  ;;  %v371_v40 = vmul.f32 0.0625, %v279_v7 }
  0xa1   : > { %v454_v17 = vrot.slane %v373_v39, %v1236_v47  ;;  %v444_v58 = vrot.slane %v371_v40, %v1236_v47 }
  0xa2   : > { %v327_v15 = vpop.xlane.xlu1 %326  ;;  %v324_v16 = vpop.xlane.xlu0 %323 }
  0xa3   : > { %v387_v53 = vmul.f32 0.0625, %v327_v15  ;;  %v386_v54 = vmul.f32 0.0625, %v324_v16  ;;  %v455_v3 = vsel %vm445_vm8, %v454_v17, %v450_v0  ;;  %v446_v4 = vsel %vm445_vm8, %v444_v58, %v439_v43 }
  0xa4   : > { %v583_v12 = vsel %vm582_vm1, %v455_v3, %v446_v4 }
  0xa5   : > { %v517_v1 = vrot.slane %v387_v53, %v1236_v47  ;;  %v513_v2 = vrot.slane %v386_v54, %v1238_v45 }
  0xa6   : > { %v333_v18 = vpop.xlane.xlu1 %332  ;;  %v330_v21 = vpop.xlane.xlu0 %329 }
  0xa7   : > { %v389_v41 = vmul.f32 0.0625, %v333_v18  ;;  %v388_v42 = vmul.f32 0.0625, %v330_v21  ;;  %v518_v44 = vsel %vm445_vm8, %v517_v1, %v513_v2 }
  0xa9   : > { %v526_v23 = vrot.slane %v389_v41, %v1236_v47  ;;  %v522_v59 = vrot.slane %v388_v42, %v1238_v45 }
  0xaa   : > { %v291_v19 = vpop.xlane.xlu1 %290  ;;  %v288_v46 = vpop.xlane.xlu0 %287 }
  0xab   : > { %v375_v48 = vmul.f32 0.0625, %v291_v19  ;;  %v374_v49 = vmul.f32 0.0625, %v288_v46  ;;  %v527_v5 = vsel %vm445_vm8, %v526_v23, %v522_v59 }
  0xac   : > { %v596_v56 = vsel %vm582_vm1, %v527_v5, %v518_v44 }
  0xad   : > { %v463_v62 = vrot.slane %v375_v48, %v1236_v47  ;;  %v459_v63 = vrot.slane %v374_v49, %v1238_v45 }
  0xae   : > { %v339_v20 = vpop.xlane.xlu1 %338  ;;  %v336_v13 = vpop.xlane.xlu0 %335 }
  0xaf   : > { %v464_v8 = vsel %vm445_vm8, %v463_v62, %v459_v63  ;;  %v391_v32 = vmul.f32 0.0625, %v339_v20  ;;  %v390_v61 = vmul.f32 0.0625, %v336_v13 }
  0xb0   : > { %v585_v60 = vsel %vm584_vm2, %v464_v8, %v583_v12 }
  0xb1   : > { %v531_v27 = vrot.slane %v390_v61, %v1238_v45 }
  0xb2   : > { %v297_v22 = vpop.xlane.xlu1 %296  ;;  %v294_v24 = vpop.xlane.xlu0 %293 }
  0xb3   : > { %v377_v9 = vmul.f32 0.0625, %v297_v22  ;;  %v376_v10 = vmul.f32 0.0625, %v294_v24 }
  0xb5   : > { %v472_v15 = vrot.slane %v377_v9, %v1236_v47  ;;  %v468_v16 = vrot.slane %v376_v10, %v1238_v45 }
  0xb6   : > { %v345_v28 = vpop.xlane.xlu1 %344  ;;  %v342_v29 = vpop.xlane.xlu0 %341 }
  0xb7   : > { %v393_v19 = vmul.f32 0.0625, %v345_v28  ;;  %v392_v46 = vmul.f32 0.0625, %v342_v29 }
  0xb9   : > { %v540_v48 = vrot.slane %v392_v46, %v1238_v45 }
  0xba   : > { %v303_v26 = vpop.xlane.xlu1 %302  ;;  %v300_v35 = vpop.xlane.xlu0 %299 }
  0xbb   : > { %v379_v52 = vmul.f32 0.0625, %v303_v26  ;;  %v378_v11 = vmul.f32 0.0625, %v300_v35  ;;  %v535_v35 = vrot.slane %v391_v32, %v1236_v47 }
  0xbd   : > { %v481_v22 = vrot.slane %v379_v52, %v1236_v47  ;;  %v477_v24 = vrot.slane %v378_v11, %v1238_v45  ;;  %v536_v17 = vsel %vm445_vm8, %v535_v35, %v531_v27 }
  0xbe   : > { %v351_v36 = vpop.xlane.xlu1 %350  ;;  %v348_v55 = vpop.xlane.xlu0 %347  ;;  %v597_v3 = vsel %vm584_vm2, %v536_v17, %v596_v56 }
  0xbf   : > { %v395_v20 = vmul.f32 0.0625, %v351_v36  ;;  %v394_v25 = vmul.f32 0.0625, %v348_v55  ;;  %v473_v36 = vsel %vm445_vm8, %v472_v15, %v468_v16  ;;  %v544_v55 = vrot.slane %v393_v19, %v1236_v47 }
  0xc0   : > { %v482_v49 = vsel %vm445_vm8, %v481_v22, %v477_v24  ;;  %v587_v62 = vsel %vm586_vm3, %v473_v36, %v585_v60 }
  0xc1   : > { %v553_v50 = vrot.slane %v395_v20, %v1236_v47  ;;  %v549_v51 = vrot.slane %v394_v25, %v1238_v45  ;;  %v545_v1 = vsel %vm445_vm8, %v544_v55, %v540_v48  ;;  %v589_v2 = vsel %vm588_vm4, %v482_v49, %v587_v62 }
  0xc2   : > { %v309_v37 = vpop.xlane.xlu1 %308  ;;  %v306_v57 = vpop.xlane.xlu0 %305  ;;  %v598_v56 = vsel %vm586_vm3, %v545_v1, %v597_v3 }
  0xc3   : > { %v381_v6 = vmul.f32 0.0625, %v309_v37  ;;  %v380_v7 = vmul.f32 0.0625, %v306_v57  ;;  %v554_v4 = vsel %vm445_vm8, %v553_v50, %v549_v51 }
  0xc5   : > { %v490_v39 = vrot.slane %v381_v6, %v1236_v47  ;;  %v486_v40 = vrot.slane %v380_v7, %v1238_v45 }
  0xc6   : > { %v357_v33 = vpop.xlane.xlu1 %356  ;;  %v354_v34 = vpop.xlane.xlu0 %353 }
  0xc7   : > { %v397_v30 = vmul.f32 0.0625, %v357_v33  ;;  %v396_v31 = vmul.f32 0.0625, %v354_v34  ;;  %v491_v58 = vsel %vm445_vm8, %v490_v39, %v486_v40 }
  0xc8   : > { %v591_v5 = vsel %vm590_vm5, %v491_v58, %v589_v2 }
  0xc9   : > { %v562_v53 = vrot.slane %v397_v30, %v1236_v47  ;;  %v558_v54 = vrot.slane %v396_v31, %v1238_v45 }
  0xca   : > { %v315_v38 = vpop.xlane.xlu1 %314  ;;  %v312_v14 = vpop.xlane.xlu0 %311 }
  0xcb   : > { %v383_v18 = vmul.f32 0.0625, %v315_v38  ;;  %v382_v21 = vmul.f32 0.0625, %v312_v14  ;;  %v563_v8 = vsel %vm445_vm8, %v562_v53, %v558_v54  ;;  %v599_v14 = vsel %vm588_vm4, %v554_v4, %v598_v56 }
  0xcc   : > { %v600_v6 = vsel %vm590_vm5, %v563_v8, %v599_v14 }
  0xcd   : > { %v499_v28 = vrot.slane %v383_v18, %v1236_v47  ;;  %v495_v29 = vrot.slane %v382_v21, %v1238_v45 }
  0xce   : > { %v363_v26 = vpop.xlane.xlu1 %362  ;;  %v360_v13 = vpop.xlane.xlu0 %359 }
  0xcf   : > { %v399_v41 = vmul.f32 0.0625, %v363_v26  ;;  %v398_v42 = vmul.f32 0.0625, %v360_v13  ;;  %v500_v63 = vsel %vm445_vm8, %v499_v28, %v495_v29 }
  0xd0   : > { %v593_v44 = vsel %vm592_vm6, %v500_v63, %v591_v5 }
  0xd1   : > { %v571_v0 = vrot.slane %v399_v41, %v1236_v47  ;;  %v567_v43 = vrot.slane %v398_v42, %v1238_v45 }
  0xd2   : > { %v321_v37 = vpop.xlane.xlu1 %320  ;;  %v318_v57 = vpop.xlane.xlu0 %317 }
  0xd3   : > { %v385_v23 = vmul.f32 0.0625, %v321_v37  ;;  %v384_v59 = vmul.f32 0.0625, %v318_v57  ;;  %v572_v32 = vsel %vm445_vm8, %v571_v0, %v567_v43 }
  0xd4   : > { %v601_v7 = vsel %vm592_vm6, %v572_v32, %v600_v6 }
  0xd5   : > { %v508_v33 = vrot.slane %v385_v23, %v1236_v47  ;;  %v504_v34 = vrot.slane %v384_v59, %v1238_v45 }
  0xd6   : > { %v369_v9 = vpop.xlane.xlu1 %368  ;;  %v366_v10 = vpop.xlane.xlu0 %365 }
  0xd7   : > { %v509_v52 = vsel %vm445_vm8, %v508_v33, %v504_v34  ;;  %v401_v11 = vmul.f32 0.0625, %v369_v9  ;;  %v400_v12 = vmul.f32 0.0625, %v366_v10 }
  0xd8   : > { %v595_v38 = vsel %vm594_vm7, %v509_v52, %v593_v44 }
  0xd9   : > { %605 = vst.msk [vmem:[%s229_s23] sm:$0xff] %vm273_vm0, %v595_v38  ;;  %v580_v60 = vrot.slane %v401_v11, %v1236_v47  ;;  %v576_v61 = vrot.slane %v400_v12, %v1238_v45 }
  0xdb   : > { %v581_v15 = vsel %vm445_vm8, %v580_v60, %v576_v61 }
  0xdc   : > { %v602_v16 = vsel %vm594_vm7, %v581_v15, %v601_v7 }
  0xdd   : > { %606 = vst.msk [vmem:[%s229_s23 + $0x8] sm:$0xff] %vm273_vm0, %v602_v16 }
  0xde PF: > { %s13_s11 = sadd.s32 1, %s991_s11   ;;  %s1321_s9 = smov %s987_s10 }
  0xdf   : > { %p10_p5 = scmp.ge.s32.totalorder %s13_s11, 4   ;;  %s1322_s10 = smov %s1324_s12 }
  0xe1   :  { %12 = sbr.rel (!%p10_p5) target bundleno = 2 (0x2), region = 74 }

// kernel: sasa_forward.4
= control target key start
LH: loop header
LB: loop body
LE: loop exit
PB: predicated region body
PF: predicated region fallthrough
CT: control target
= control target key end

     0   :  { %vm96_vm0 = vcmask 1042432   ;;  %vm117_vm1 = vcmask 1046528   ;;  %vm140_vm2 = vcmask 1045504   ;;  %vm163_vm3 = vcmask 1044480   ;;  %s1126_s13 = smov 48   ;;  %s1127_s14 = smov 64   ;;  %s1604_s1 = inlined_call_operand.vmem [shape: f32[2,16,16], index: 1, kind: input, shape index: {}]   ;;  %s1605_s0 = inlined_call_operand.vmem [shape: f32[2,16,16], index: 0, kind: input, shape index: {}]   ;;  %s1606_s2 = inlined_call_operand.vmem [shape: f32[112,16], index: 2, kind: input, shape index: {}]   ;;  %s1607_s3 = inlined_call_operand.vmem [shape: f32[1,16], index: 3, kind: input, shape index: {}]   ;;  %s1608_s4 = inlined_call_operand.vmem [shape: f32[1,16], index: 4, kind: input, shape index: {}]   ;;  %s1609_s5 = inlined_call_operand.vmem [shape: f32[2,16,16], index: 5, kind: output, shape index: {0}]   ;;  %s1610_s6 = inlined_call_operand.vmem [shape: f32[2,16,16], index: 6, kind: output, shape index: {1}]  }
   0x1   :  { %v284_v0 = vld [vmem:[%s1604_s1] sm:$0xff]  ;;  %v285_v2 = vld [vmem:[%s1604_s1 + $0x8] sm:$0xff]  ;;  %v286_v4 = vld [vmem:[%s1604_s1 + $0x10] sm:$0xff]  ;;  %vm186_vm4 = vcmask 1043456   ;;  %s1128_s27 = smov 80   ;;  %vm231_vm5 = vcmask 1041408  }
   0x2   :  { %v24_v1 = vld [vmem:[%s1605_s0] sm:$0xff]  ;;  %288 = vxpose.xlu1.b32.start [1/2] (short) (narrow) %v284_v0, 16  ;;  %v25_v3 = vld [vmem:[%s1605_s0 + $0x8] sm:$0xff]  ;;  %v26_v5 = vld [vmem:[%s1605_s0 + $0x10] sm:$0xff]  ;;  %s1129_s10 = smov 96   ;;  %vm254_vm6 = vcmask 130048  }
   0x3   :  { %28 = vxpose.xlu0.b32.start [1/2] (short) (narrow) %v24_v1, 16  ;;  %v287_v6 = vld [vmem:[%s1604_s1 + $0x18] sm:$0xff]  ;;  %s1125_s1 = smov 32   ;;  %vm259_vm7 = vcmask 261120   ;;  %vm264_vm8 = vcmask 392192   ;;  %vm269_vm9 = vcmask 523264  }
   0x4   :  { %v27_v7 = vld [vmem:[%s1605_s0 + $0x18] sm:$0xff]  ;;  %s1124_s0 = smov 16   ;;  %vm279_vm10 = vcmask 785408   ;;  %vm274_vm11 = vcmask 654336   ;;  %vm546_vm12 = vcmask 916480  }
   0x6   :  { %289 = vxpose.xlu1.b32.end [2/2] (short) (narrow) %v285_v2, 16  ;;  %v545_v2 = vld [vmem:[%s1606_s2 + $0x68] sm:$0xff] }
   0x7   :  { %29 = vxpose.xlu0.b32.end [2/2] (short) (narrow) %v25_v3, 16  ;;  %v544_v3 = vld [vmem:[%s1606_s2 + $0x60] sm:$0xff]  ;;  %1053 = vmatprep.subr.mxu1 %v545_v2 }
   0x8   :  { %1013 = vmatprep.subr.mxu0 %v545_v2  ;;  %1067 = vmatpush3.msra.mxu1 %v545_v2 }
   0x9   :  { %1014 = vmatpush3.msra.mxu0 %v545_v2  ;;  %1054 = vmatprep.subr.mxu1 %v544_v3 }
   0xa   :  { %320 = vxpose.xlu1.b32.start [1/2] (short) (narrow) %v286_v4, 16  ;;  %1015 = vmatprep.subr.mxu0 %v544_v3 }
   0xb   :  { %60 = vxpose.xlu0.b32.start [1/2] (short) (narrow) %v26_v5, 16  ;;  %1068 = vmatpush3.msra.mxu1 %v544_v3 }
   0xc   :  { %1016 = vmatpush3.msra.mxu0 %v544_v3 }
   0xe   :  { %321 = vxpose.xlu1.b32.end [2/2] (short) (narrow) %v287_v6, 16 }
   0xf   :  { %61 = vxpose.xlu0.b32.end [2/2] (short) (narrow) %v27_v7, 16 }
  0x7e   :  { %v304_v8 = vpop.trf.xlu1 }
  0x7f   :  { %v44_v9 = vpop.trf.xlu0  ;;  %v356_v10 = vrot.slane %v304_v8, 5 }
  0x80   :  { %v97_v11 = vrot.slane %v44_v9, 5  ;;  %v543_v9 = vld [vmem:[%s1606_s2 + $0x58] sm:$0xff] }
  0x81   :  { %v1193_v15 = vsel %vm96_vm0, 0.0, %v356_v10  ;;  %1055 = vmatprep.subr.mxu1 %v543_v9  ;;  %1017 = vmatprep.subr.mxu0 %v543_v9 }
  0x82   :  { %v1190_v12 = vsel %vm96_vm0, 0.0, %v97_v11  ;;  %v305_v13 = vpop.trf.xlu1  ;;  %v376_v22 = vrot.slane %v1193_v15, 1  ;;  %v398_v29 = vrot.slane %v1193_v15, 2  ;;  %v420_v42 = vrot.slane %v1193_v15, 3  ;;  %1069 = vmatpush3.msra.mxu1 %v543_v9  ;;  %1018 = vmatpush3.msra.mxu0 %v543_v9 }
  0x83   :  { %v45_v14 = vpop.trf.xlu0  ;;  %v357_v16 = vrot.slane %v305_v13, 5  ;;  %v118_v18 = vrot.slane %v1190_v12, 1  ;;  %v141_v30 = vrot.slane %v1190_v12, 2  ;;  %v164_v31 = vrot.slane %v1190_v12, 3 }
  0x84   :  { %v98_v17 = vrot.slane %v45_v14, 5  ;;  %v187_v43 = vrot.slane %v1190_v12, 4  ;;  %v442_v56 = vrot.slane %v1193_v15, 4 }
  0x85   :  { %v1197_v19 = vsel %vm96_vm0, %v356_v10, %v357_v16  ;;  %v1222_v36 = vsel %vm96_vm0, %v357_v16, 0.0  ;;  %v542_v16 = vld [vmem:[%s1606_s2 + $0x50] sm:$0xff] }
  0x86   :  { %v1200_v20 = vsel %vm96_vm0, %v97_v11, %v98_v17  ;;  %v1203_v21 = vsel %vm96_vm0, %v98_v17, 0.0  ;;  %v377_v23 = vrot.slane %v1197_v19, 1  ;;  %v399_v28 = vrot.slane %v1197_v19, 2  ;;  %v336_v37 = vpop.trf.xlu1  ;;  %1056 = vmatprep.subr.mxu1 %v542_v16  ;;  %1019 = vmatprep.subr.mxu0 %v542_v16 }
  0x87   :  { %v119_v24 = vrot.slane %v1200_v20, 1  ;;  %v121_v27 = vrot.slane %v1203_v21, 1  ;;  %v142_v34 = vrot.slane %v1200_v20, 2  ;;  %v165_v35 = vrot.slane %v1200_v20, 3  ;;  %v76_v48 = vpop.trf.xlu0  ;;  %1070 = vmatpush3.msra.mxu1 %v542_v16  ;;  %1020 = vmatpush3.msra.mxu0 %v542_v16 }
  0x88   :  { %v378_v25 = vsel %vm117_vm1, %v376_v22, %v377_v23  ;;  %v400_v33 = vsel %vm140_vm2, %v398_v29, %v399_v28  ;;  %v379_v40 = vrot.slane %v1222_v36, 1  ;;  %v421_v41 = vrot.slane %v1197_v19, 3 }
  0x89   :  { %v120_v26 = vsel %vm117_vm1, %v118_v18, %v119_v24  ;;  %386 = vrot.lane.b32.xlu1 %v378_v25, %s1124_s0  ;;  %v122_v32 = vsel %vm117_vm1, %v119_v24, %v121_v27  ;;  %v143_v38 = vsel %vm140_vm2, %v141_v30, %v142_v34  ;;  %v166_v39 = vsel %vm163_vm3, %v164_v31, %v165_v35  ;;  %v541_v24 = vld [vmem:[%s1606_s2 + $0x48] sm:$0xff]  ;;  %v540_v31 = vld [vmem:[%s1606_s2 + $0x40] sm:$0xff] }
  0x8a   :  { %128 = vrot.lane.b32.xlu0 %v120_v26, %s1124_s0  ;;  %v380_v44 = vsel %vm117_vm1, %v377_v23, %v379_v40  ;;  %v422_v45 = vsel %vm163_vm3, %v420_v42, %v421_v41  ;;  %v144_v46 = vrot.slane %v1203_v21, 2  ;;  %v188_v47 = vrot.slane %v1200_v20, 4  ;;  %v1240_v49 = vpop.trf.xlu1  ;;  %1057 = vmatprep.subr.mxu1 %v541_v24  ;;  %v538_v40 = vld [vmem:[%s1606_s2 + $0x30] sm:$0xff] }
  0x8b   :  { %v359_v50 = vrot.slane %v336_v37, 5  ;;  %v360_v51 = vrot.slane %v1240_v49, 5  ;;  %v401_v54 = vrot.slane %v1222_v36, 2  ;;  %v443_v55 = vrot.slane %v1197_v19, 4  ;;  %v1252_v57 = vpop.trf.xlu0  ;;  %1021 = vmatprep.subr.mxu0 %v541_v24  ;;  %1071 = vmatpush3.msra.mxu1 %v541_v24 }
  0x8c   :  { %v145_v52 = vsel %vm140_vm2, %v142_v34, %v144_v46  ;;  %v189_v53 = vsel %vm186_vm4, %v187_v43, %v188_v47  ;;  %v167_v62 = vrot.slane %v1203_v21, 3  ;;  %v190_v63 = vrot.slane %v1203_v21, 4  ;;  %1022 = vmatpush3.msra.mxu0 %v541_v24  ;;  %1058 = vmatprep.subr.mxu1 %v540_v31  ;;  %v537_v46 = vld [vmem:[%s1606_s2 + $0x28] sm:$0xff] }
  0x8d   :  { %130 = vrot.lane.b32.xlu1 %v122_v32, %s1124_s0  ;;  %v1255_v58 = vsel %vm96_vm0, 0.0, %v359_v50  ;;  %v1260_v59 = vsel %vm96_vm0, %v359_v50, %v360_v51  ;;  %v402_v60 = vsel %vm140_vm2, %v399_v28, %v401_v54  ;;  %v444_v61 = vsel %vm186_vm4, %v442_v56, %v443_v55  ;;  %1023 = vmatprep.subr.mxu0 %v540_v31 }
  0x8e   :  { %408 = vrot.lane.b32.xlu0 %v400_v33, %s1125_s1  ;;  %v100_v0 = vrot.slane %v76_v48, 5  ;;  %v101_v1 = vrot.slane %v1252_v57, 5  ;;  %v381_v4 = vrot.slane %v1255_v58, 1  ;;  %v382_v5 = vrot.slane %v1260_v59, 1  ;;  %v539_v33 = vld [vmem:[%s1606_s2 + $0x38] sm:$0xff]  ;;  %1072 = vmatpush3.msra.mxu1 %v540_v31 }
  0x8f   :  { %v168_v6 = vsel %vm163_vm3, %v165_v35, %v167_v62  ;;  %v191_v7 = vsel %vm186_vm4, %v188_v47, %v190_v63  ;;  %v423_v8 = vrot.slane %v1222_v36, 3  ;;  %v465_v14 = vrot.slane %v1197_v19, 5  ;;  %1024 = vmatpush3.msra.mxu0 %v540_v31  ;;  %1059 = vmatprep.subr.mxu1 %v539_v33  ;;  %v536_v47 = vld [vmem:[%s1606_s2 + $0x20] sm:$0xff]  ;;  %v534_v62 = vld [vmem:[%s1606_s2 + $0x10] sm:$0xff]  ;;  %v533_v63 = vld [vmem:[%s1606_s2 + $0x8] sm:$0xff] }
  0x90   :  { %v1286_v10 = vsel %vm96_vm0, 0.0, %v100_v0  ;;  %v1291_v11 = vsel %vm96_vm0, %v100_v0, %v101_v1  ;;  %v383_v13 = vsel %vm117_vm1, %v381_v4, %v382_v5  ;;  %v464_v23 = vrot.slane %v1193_v15, 5  ;;  %1025 = vmatprep.subr.mxu0 %v539_v33  ;;  %1073 = vmatpush3.msra.mxu1 %v539_v33  ;;  %v532_v4 = vld [vmem:[%s1606_s2] sm:$0xff] }
  0x91   :  { %151 = vrot.lane.b32.xlu1 %v143_v38, %s1125_s1  ;;  %v424_v17 = vsel %vm163_vm3, %v421_v41, %v423_v8  ;;  %v123_v18 = vrot.slane %v1286_v10, 1  ;;  %v124_v22 = vrot.slane %v1291_v11, 1  ;;  %v209_v26 = vrot.slane %v1190_v12, 5  ;;  %1026 = vmatpush3.msra.mxu0 %v539_v33 }
  0x92   :  { %174 = vrot.lane.b32.xlu0 %v166_v39, %s1126_s13  ;;  %v466_v25 = vsel %vm96_vm0, %v464_v23, %v465_v14  ;;  %v146_v28 = vrot.slane %v1286_v10, 2  ;;  %v147_v29 = vrot.slane %v1291_v11, 2  ;;  %v210_v30 = vrot.slane %v1200_v20, 5  ;;  %1060 = vmatprep.subr.mxu1 %v538_v40 }
  0x93   :  { %v125_v27 = vsel %vm117_vm1, %v123_v18, %v124_v22  ;;  %v232_v32 = vrot.slane %v1190_v12, 6  ;;  %v233_v37 = vrot.slane %v1200_v20, 6  ;;  %v445_v38 = vrot.slane %v1222_v36, 4  ;;  %1027 = vmatprep.subr.mxu0 %v538_v40  ;;  %1074 = vmatpush3.msra.mxu1 %v538_v40 }
  0x94   :  { %v148_v34 = vsel %vm140_vm2, %v146_v28, %v147_v29  ;;  %v211_v35 = vsel %vm96_vm0, %v209_v26, %v210_v30  ;;  %v1339_v39 = vsel %vm96_vm0, %v101_v1, 0.0  ;;  %v403_v41 = vrot.slane %v1255_v58, 2  ;;  %1028 = vmatpush3.msra.mxu0 %v538_v40  ;;  %1061 = vmatprep.subr.mxu1 %v537_v46 }
  0x95   :  { %388 = vrot.lane.b32.xlu1 %v380_v44, %s1124_s0  ;;  %v234_v42 = vsel %vm231_vm5, %v232_v32, %v233_v37  ;;  %v446_v43 = vsel %vm186_vm4, %v443_v55, %v445_v38  ;;  %v404_v44 = vrot.slane %v1260_v59, 2  ;;  %1029 = vmatprep.subr.mxu0 %v537_v46  ;;  %v1370_v54 = vsel %vm96_vm0, %v360_v51, 0.0  ;;  %v535_v55 = vld [vmem:[%s1606_s2 + $0x18] sm:$0xff] }
  0x96   :  { %430 = vrot.lane.b32.xlu0 %v422_v45, %s1126_s13  ;;  %v126_v45 = vrot.slane %v1339_v39, 1  ;;  %1075 = vmatpush3.msra.mxu1 %v537_v46  ;;  %v486_v56 = vrot.slane %v1193_v15, 6  ;;  %v169_v57 = vrot.slane %v1286_v10, 3  ;;  %v406_v2 = vrot.slane %v1370_v54, 2 }
  0x97   :  { %v405_v48 = vsel %vm140_vm2, %v403_v41, %v404_v44  ;;  %1030 = vmatpush3.msra.mxu0 %v537_v46  ;;  %1062 = vmatprep.subr.mxu1 %v536_v47  ;;  %v467_v3 = vrot.slane %v1222_v36, 5  ;;  %v149_v8 = vrot.slane %v1339_v39, 2  ;;  %v192_v9 = vrot.slane %v1286_v10, 4 }
  0x98   :  { %v127_v50 = vsel %vm117_vm1, %v124_v22, %v126_v45  ;;  %1031 = vmatprep.subr.mxu0 %v536_v47  ;;  %1076 = vmatpush3.msra.mxu1 %v536_v47  ;;  %v235_v16 = vrot.slane %v1203_v21, 6  ;;  %v448_v18 = vrot.slane %v1260_v59, 4  ;;  %v425_v24 = vrot.slane %v1255_v58, 3 }
  0x99   :  { %153 = vrot.lane.b32.xlu1 %v145_v52, %s1125_s1  ;;  %v487_v52 = vrot.slane %v1197_v19, 6  ;;  %1032 = vmatpush3.msra.mxu0 %v536_v47  ;;  %v215_v28 = vrot.slane %v1291_v11, 5  ;;  %v470_v33 = vrot.slane %v1260_v59, 5  ;;  %v238_v40 = vrot.slane %v1291_v11, 6 }
  0x9a   :  { %197 = vrot.lane.b32.xlu0 %v189_v53, %s1127_s14  ;;  %v212_v53 = vrot.slane %v1203_v21, 5  ;;  %1063 = vmatprep.subr.mxu1 %v535_v55  ;;  %v236_v23 = vsel %vm231_vm5, %v233_v37, %v235_v16  ;;  %v214_v21 = vrot.slane %v1286_v10, 5  ;;  %v195_v41 = vrot.slane %v1339_v39, 4 }
  0x9b   :  { %v488_v49 = vsel %vm231_vm5, %v486_v56, %v487_v52  ;;  %1033 = vmatprep.subr.mxu0 %v535_v55  ;;  %1077 = vmatpush3.msra.mxu1 %v535_v55  ;;  %v492_v45 = vrot.slane %v1260_v59, 6  ;;  %v450_v46 = vrot.slane %v1370_v54, 4  ;;  %v472_v56 = vrot.slane %v1370_v54, 5 }
  0x9c   :  { %v213_v51 = vsel %vm96_vm0, %v210_v30, %v212_v53  ;;  %1034 = vmatpush3.msra.mxu0 %v535_v55  ;;  %1064 = vmatprep.subr.mxu1 %v534_v62  ;;  %v469_v30 = vrot.slane %v1255_v58, 5  ;;  %v216_v31 = vsel %vm96_vm0, %v214_v21, %v215_v28 }
  0x9d   :  { %410 = vrot.lane.b32.xlu1 %v402_v60, %s1125_s1  ;;  %v170_v60 = vrot.slane %v1291_v11, 3  ;;  %1035 = vmatprep.subr.mxu0 %v534_v62 }
  0x9e   :  { %452 = vrot.lane.b32.xlu0 %v444_v61, %s1127_s14  ;;  %v384_v61 = vrot.slane %v1370_v54, 1  ;;  %1078 = vmatpush3.msra.mxu1 %v534_v62  ;;  %v471_v37 = vsel %vm96_vm0, %v469_v30, %v470_v33 }
  0x9f   :  { %v171_v0 = vsel %vm163_vm3, %v169_v57, %v170_v60  ;;  %1036 = vmatpush3.msra.mxu0 %v534_v62  ;;  %1065 = vmatprep.subr.mxu1 %v533_v63  ;;  %v473_v57 = vsel %vm96_vm0, %v470_v33, %v472_v56 }
  0xa0   :  { %v385_v1 = vsel %vm117_vm1, %v382_v5, %v384_v61  ;;  %1037 = vmatprep.subr.mxu0 %v533_v63  ;;  %1079 = vmatpush3.msra.mxu1 %v533_v63  ;;  %v407_v5 = vsel %vm140_vm2, %v404_v44, %v406_v2 }
  0xa1   :  { %176 = vrot.lane.b32.xlu1 %v168_v6, %s1126_s13  ;;  %1038 = vmatpush3.msra.mxu0 %v533_v63  ;;  %v468_v6 = vsel %vm96_vm0, %v465_v14, %v467_v3  ;;  %v150_v14 = vsel %vm140_vm2, %v147_v29, %v149_v8  ;;  %v172_v29 = vrot.slane %v1339_v39, 3 }
  0xa2   :  { %199 = vrot.lane.b32.xlu0 %v191_v7, %s1127_s14  ;;  %v489_v7 = vrot.slane %v1222_v36, 6  ;;  %1066 = vmatprep.subr.mxu1 %v532_v4  ;;  %v193_v36 = vrot.slane %v1291_v11, 4 }
  0xa3   :  { %1039 = vmatprep.subr.mxu0 %v532_v4  ;;  %1080 = vmatpush3.msra.mxu1 %v532_v4  ;;  %v173_v32 = vsel %vm163_vm3, %v170_v60, %v172_v29 }
  0xa4   :  { %1040 = vmatpush3.msra.mxu0 %v532_v4  ;;  %v194_v22 = vsel %vm186_vm4, %v192_v9, %v193_v36  ;;  %v196_v44 = vsel %vm186_vm4, %v193_v36, %v195_v41 }
  0xa5   :  { %432 = vrot.lane.b32.xlu1 %v424_v17, %s1126_s13  ;;  %v447_v17 = vrot.slane %v1255_v58, 4 }
  0xa6   :  { %390 = vrot.lane.b32.xlu0 %v383_v13, %s1124_s0  ;;  %v490_v13 = vsel %vm231_vm5, %v487_v52, %v489_v7  ;;  %v217_v52 = vrot.slane %v1339_v39, 5 }
  0xa7   :  { %v449_v26 = vsel %vm186_vm4, %v447_v17, %v448_v18 }
  0xa8   :  { %v218_v55 = vsel %vm96_vm0, %v215_v28, %v217_v52 }
  0xa9   :  { %132 = vrot.lane.b32.xlu1 %v125_v27, %s1124_s0 }
  0xaa   :  { %474 = vrot.lane.b32.xlu0 %v466_v25, %s1128_s27  ;;  %v426_v25 = vrot.slane %v1260_v59, 3 }
  0xac   :  { %v427_v27 = vsel %vm163_vm3, %v425_v24, %v426_v25 }
  0xad   :  { %219 = vrot.lane.b32.xlu1 %v211_v35, %s1128_s27  ;;  %v237_v35 = vrot.slane %v1286_v10, 6 }
  0xae   :  { %155 = vrot.lane.b32.xlu0 %v148_v34, %s1125_s1  ;;  %v428_v34 = vrot.slane %v1370_v54, 3 }
  0xb0   :  { %v429_v38 = vsel %vm163_vm3, %v426_v25, %v428_v34 }
  0xb1   :  { %454 = vrot.lane.b32.xlu1 %v446_v43, %s1127_s14  ;;  %v239_v43 = vsel %vm231_vm5, %v237_v35, %v238_v40 }
  0xb2   :  { %242 = vrot.lane.b32.xlu0 %v234_v42, %s1129_s10  ;;  %v491_v42 = vrot.slane %v1255_v58, 6 }
  0xb4   :  { %v493_v47 = vsel %vm231_vm5, %v491_v42, %v492_v45 }
  0xb5   :  { %134 = vrot.lane.b32.xlu1 %v127_v50, %s1124_s0  ;;  %v494_v50 = vrot.slane %v1370_v54, 6 }
  0xb6   :  { %412 = vrot.lane.b32.xlu0 %v405_v48, %s1125_s1  ;;  %v451_v48 = vsel %vm186_vm4, %v448_v18, %v450_v46 }
  0xb7   :  { %v495_v53 = vsel %vm231_vm5, %v492_v45, %v494_v50 }
  0xb9   :  { %221 = vrot.lane.b32.xlu1 %v213_v51, %s1128_s27 }
  0xba   :  { %496 = vrot.lane.b32.xlu0 %v488_v49, %s1129_s10  ;;  %v240_v49 = vrot.slane %v1339_v39, 6 }
  0xbc   :  { %v241_v51 = vsel %vm231_vm5, %v238_v40, %v240_v49 }
  0xbd   :  { %392 = vrot.lane.b32.xlu1 %v385_v1, %s1124_s0 }
  0xbe   :  { %178 = vrot.lane.b32.xlu0 %v171_v0, %s1126_s13 }
  0xc1   :  { %476 = vrot.lane.b32.xlu1 %v468_v6, %s1128_s27 }
  0xc2   :  { %414 = vrot.lane.b32.xlu0 %v407_v5, %s1125_s1 }
  0xc5   :  { %157 = vrot.lane.b32.xlu1 %v150_v14, %s1125_s1 }
  0xc6   :  { %498 = vrot.lane.b32.xlu0 %v490_v13, %s1129_s10 }
  0xc9   :  { %244 = vrot.lane.b32.xlu1 %v236_v23, %s1129_s10 }
  0xca   :  { %201 = vrot.lane.b32.xlu0 %v194_v22, %s1127_s14 }
  0xcd   :  { %434 = vrot.lane.b32.xlu1 %v427_v27, %s1126_s13 }
  0xce   :  { %456 = vrot.lane.b32.xlu0 %v449_v26, %s1127_s14 }
  0xd1   :  { %180 = vrot.lane.b32.xlu1 %v173_v32, %s1126_s13 }
  0xd2   :  { %223 = vrot.lane.b32.xlu0 %v216_v31, %s1128_s27 }
  0xd5   :  { %436 = vrot.lane.b32.xlu1 %v429_v38, %s1126_s13 }
  0xd6   :  { %478 = vrot.lane.b32.xlu0 %v471_v37, %s1128_s27 }
  0xd9   :  { %203 = vrot.lane.b32.xlu1 %v196_v44, %s1127_s14 }
  0xda   :  { %246 = vrot.lane.b32.xlu0 %v239_v43, %s1129_s10 }
  0xdd   :  { %458 = vrot.lane.b32.xlu1 %v451_v48, %s1127_s14 }
  0xde   :  { %500 = vrot.lane.b32.xlu0 %v493_v47, %s1129_s10 }
  0xe1   :  { %225 = vrot.lane.b32.xlu1 %v218_v55, %s1128_s27 }
  0xe2   :  { %502 = vrot.lane.b32.xlu0 %v495_v53, %s1129_s10 }
  0xe5   :  { %480 = vrot.lane.b32.xlu1 %v473_v57, %s1128_s27 }
  0xe9   :  { %248 = vrot.lane.b32.xlu1 %v241_v51, %s1129_s10 }
  0xfb   :  { %v387_v60 = vpop.permute.xlu1 %386 }
  0xfc   :  { %v129_v61 = vpop.permute.xlu0 %128  ;;  %v508_v26 = vsel %vm254_vm6, %v1193_v15, %v387_v60 }
  0xfd   :  { %v255_v36 = vsel %vm254_vm6, %v1190_v12, %v129_v61 }
  0xff   :  { %v131_v62 = vpop.permute.xlu1 %130 }
 0x100   :  { %v409_v63 = vpop.permute.xlu0 %408  ;;  %v256_v43 = vsel %vm254_vm6, %v1200_v20, %v131_v62 }
 0x101   :  { %v512_v29 = vsel %vm259_vm7, %v508_v26, %v409_v63 }
 0x103   :  { %v152_v0 = vpop.permute.xlu1 %151 }
 0x104   :  { %v175_v54 = vpop.permute.xlu0 %174  ;;  %v260_v16 = vsel %vm259_vm7, %v255_v36, %v152_v0 }
 0x105   :  { %v265_v22 = vsel %vm264_vm8, %v260_v16, %v175_v54 }
 0x107   :  { %v389_v1 = vpop.permute.xlu1 %388 }
 0x108   :  { %v431_v2 = vpop.permute.xlu0 %430  ;;  %v509_v15 = vsel %vm254_vm6, %v1197_v19, %v389_v1 }
 0x109   :  { %v516_v30 = vsel %vm264_vm8, %v512_v29, %v431_v2 }
 0x10b   :  { %v154_v3 = vpop.permute.xlu1 %153 }
 0x10c   :  { %v198_v4 = vpop.permute.xlu0 %197  ;;  %v261_v45 = vsel %vm259_vm7, %v256_v43, %v154_v3 }
 0x10d   :  { %v270_v23 = vsel %vm269_vm9, %v265_v22, %v198_v4 }
 0x10f   :  { %v411_v5 = vpop.permute.xlu1 %410 }
 0x110   :  { %v453_v6 = vpop.permute.xlu0 %452  ;;  %v513_v42 = vsel %vm259_vm7, %v509_v15, %v411_v5 }
 0x111   :  { %v520_v31 = vsel %vm269_vm9, %v516_v30, %v453_v6 }
 0x113   :  { %v177_v7 = vpop.permute.xlu1 %176 }
 0x114   :  { %v200_v39 = vpop.permute.xlu0 %199  ;;  %v266_v47 = vsel %vm264_vm8, %v261_v45, %v177_v7 }
 0x115   :  { %v271_v53 = vsel %vm269_vm9, %v266_v47, %v200_v39 }
 0x117   :  { %v433_v8 = vpop.permute.xlu1 %432 }
 0x118   :  { %v1473_v9 = vpop.permute.xlu0 %390  ;;  %v517_v44 = vsel %vm264_vm8, %v513_v42, %v433_v8 }
 0x119   :  { %v510_v1 = vsel %vm254_vm6, %v1255_v58, %v1473_v9 }
 0x11b   :  { %v133_v13 = vpop.permute.xlu1 %132 }
 0x11c   :  { %v475_v14 = vpop.permute.xlu0 %474  ;;  %v257_v62 = vsel %vm254_vm6, %v1286_v10, %v133_v13 }
 0x11d   :  { %v524_v32 = vsel %vm274_vm11, %v520_v31, %v475_v14 }
 0x11f   :  { %v220_v17 = vpop.permute.xlu1 %219 }
 0x120   :  { %v156_v18 = vpop.permute.xlu0 %155  ;;  %v275_v24 = vsel %vm274_vm11, %v270_v23, %v220_v17 }
 0x121   :  { %v262_v54 = vsel %vm259_vm7, %v257_v62, %v156_v18 }
 0x123   :  { %v455_v25 = vpop.permute.xlu1 %454 }
 0x124   :  { %v243_v21 = vpop.permute.xlu0 %242  ;;  %v521_v46 = vsel %vm269_vm9, %v517_v44, %v455_v25 }
 0x125   :  { %v280_v12 = vsel %vm279_vm10, %v275_v24, %v243_v21 }
 0x126   :  { %1041 = vmatprep.mubr.msk.f32.mxu0 %vm546_vm12, %v280_v12 }
 0x127   :  { %v135_v27 = vpop.permute.xlu1 %134 }
 0x128   :  { %v413_v28 = vpop.permute.xlu0 %412  ;;  %v258_v22 = vsel %vm254_vm6, %v1291_v11, %v135_v27 }
 0x129   :  { %v514_v3 = vsel %vm259_vm7, %v510_v1, %v413_v28 }
 0x12b   :  { %v222_v33 = vpop.permute.xlu1 %221 }
 0x12c   :  { %v497_v34 = vpop.permute.xlu0 %496  ;;  %v276_v20 = vsel %vm274_vm11, %v271_v53, %v222_v33 }
 0x12d   :  { %v528_v35 = vsel %vm279_vm10, %v524_v32, %v497_v34 }
 0x12e   :  { %1047 = vmatprep.mubr.msk.f32.mxu1 %vm546_vm12, %v528_v35 }
 0x12f   :  { %v393_v37 = vpop.permute.xlu1 %392 }
 0x130   :  { %v179_v38 = vpop.permute.xlu0 %178  ;;  %v511_v16 = vsel %vm254_vm6, %v1260_v59, %v393_v37 }
 0x131   :  { %v267_v2 = vsel %vm264_vm8, %v262_v54, %v179_v38 }
 0x133   :  { %v477_v40 = vpop.permute.xlu1 %476 }
 0x134   :  { %v415_v41 = vpop.permute.xlu0 %414  ;;  %v525_v48 = vsel %vm274_vm11, %v521_v46, %v477_v40 }
 0x135   :  { %v515_v17 = vsel %vm259_vm7, %v511_v16, %v415_v41 }
 0x137   :  { %v158_v50 = vpop.permute.xlu1 %157 }
 0x138   :  { %v499_v52 = vpop.permute.xlu0 %498  ;;  %v263_v25 = vsel %vm259_vm7, %v258_v22, %v158_v50 }
 0x139   :  { %v529_v19 = vsel %vm279_vm10, %v525_v48, %v499_v52 }
 0x13a   :  { %1048 = vmatmul.mubr.msk.f32.vlgmr.msra.gmra.mxu1 %vm546_vm12, %v529_v19 }
 0x13b   :  { %v245_v55 = vpop.permute.xlu1 %244 }
 0x13c   :  { %v202_v56 = vpop.permute.xlu0 %201  ;;  %v281_v57 = vsel %vm279_vm10, %v276_v20, %v245_v55 }
 0x13d   :  { %1042 = vmatmul.mubr.msk.f32.vlgmr.msra.gmra.mxu0 %vm546_vm12, %v281_v57  ;;  %v272_v4 = vsel %vm269_vm9, %v267_v2, %v202_v56 }
 0x13f   :  { %v435_v49 = vpop.permute.xlu1 %434 }
 0x140   :  { %v457_v51 = vpop.permute.xlu0 %456  ;;  %v518_v5 = vsel %vm264_vm8, %v514_v3, %v435_v49 }
 0x141   :  { %v522_v8 = vsel %vm269_vm9, %v518_v5, %v457_v51 }
 0x143   :  { %v181_v60 = vpop.permute.xlu1 %180 }
 0x144   :  { %v224_v61 = vpop.permute.xlu0 %223  ;;  %v268_v26 = vsel %vm264_vm8, %v263_v25, %v181_v60 }
 0x145   :  { %v277_v6 = vsel %vm274_vm11, %v272_v4, %v224_v61 }
 0x147   :  { %v437_v63 = vpop.permute.xlu1 %436 }
 0x148   :  { %v479_v0 = vpop.permute.xlu0 %478  ;;  %v519_v18 = vsel %vm264_vm8, %v515_v17, %v437_v63 }
 0x149   :  { %v526_v58 = vsel %vm274_vm11, %v522_v8, %v479_v0 }
 0x14b   :  { %v204_v7 = vpop.permute.xlu1 %203 }
 0x14c   :  { %v247_v10 = vpop.permute.xlu0 %246  ;;  %v273_v59 = vsel %vm269_vm9, %v268_v26, %v204_v7 }
 0x14d   :  { %v282_v39 = vsel %vm279_vm10, %v277_v6, %v247_v10 }
 0x14e   :  { %1044 = vmatprep.mubr.msk.f32.mxu0 %vm546_vm12, %v282_v39 }
 0x14f   :  { %v459_v9 = vpop.permute.xlu1 %458 }
 0x150   :  { %v501_v13 = vpop.permute.xlu0 %500  ;;  %v523_v23 = vsel %vm269_vm9, %v519_v18, %v459_v9 }
 0x151   :  { %v530_v14 = vsel %vm279_vm10, %v526_v58, %v501_v13 }
 0x152   :  { %1050 = vmatprep.mubr.msk.f32.mxu1 %vm546_vm12, %v530_v14 }
 0x153   :  { %v226_v36 = vpop.permute.xlu1 %225 }
 0x154   :  { %v503_v21 = vpop.permute.xlu0 %502  ;;  %v278_v29 = vsel %vm274_vm11, %v273_v59, %v226_v36 }
 0x157   :  { %v481_v24 = vpop.permute.xlu1 %480 }
 0x158   :  { %v527_v12 = vsel %vm274_vm11, %v523_v23, %v481_v24 }
 0x159   :  { %v531_v28 = vsel %vm279_vm10, %v527_v12, %v503_v21 }
 0x15a   :  { %1051 = vmatmul.mubr.msk.f32.gmra.mxu1 %vm546_vm12, %v531_v28 }
 0x15b   :  { %v249_v30 = vpop.permute.xlu1 %248 }
 0x15c   :  { %v283_v11 = vsel %vm279_vm10, %v278_v29, %v249_v30 }
 0x15d   :  { %1045 = vmatmul.mubr.msk.f32.gmra.mxu0 %vm546_vm12, %v283_v11 }
 0x1fa   :  { %v1049_v27 = vpop.f32.mrf.mxu1 }
 0x1fb   :  { %v764_v37 = vsel %vm254_vm6, %v1049_v27, 0.0 }
 0x1fc   :  { %v657_v32 = vpop.f32.mrf.mxu1 }
 0x1fd   :  { %v1043_v31 = vpop.f32.mrf.mxu0  ;;  %v763_v33 = vsel %vm254_vm6, %v657_v32, 0.0 }
 0x1fe   :  { %v765_v38 = vadd.f32 %v764_v37, %v763_v33  ;;  %v677_v43 = vsel %vm254_vm6, %v1043_v31, 0.0 }
 0x1ff   :  { %v637_v34 = vpop.f32.mrf.mxu0 }
 0x200   :  { %v676_v15 = vsel %vm254_vm6, %v637_v34, 0.0 }
 0x201   :  { %v678_v45 = vadd.f32 %v677_v43, %v676_v15 }
 0x21a   :  { %v1052_v35 = vpop.f32.mrf.mxu1 }
 0x21b   :  { %v768_v46 = vsel %vm254_vm6, %v1052_v35, 0.0 }
 0x21c   :  { %v667_v40 = vpop.f32.mrf.mxu1 }
 0x21d   :  { %v766_v41 = vsel %vm254_vm6, %v667_v40, 0.0  ;;  %v1046_v42 = vpop.f32.mrf.mxu0 }
 0x21e   :  { %v767_v44 = vadd.f32 %v766_v41, %v765_v38  ;;  %v681_v53 = vsel %vm254_vm6, %v1046_v42, 0.0 }
 0x21f   :  { %v647_v47 = vpop.f32.mrf.mxu0 }
 0x220   :  { %v769_v48 = vadd.f32 %v768_v46, %v767_v44  ;;  %v679_v50 = vsel %vm254_vm6, %v647_v47, 0.0 }
 0x221   :  { %v680_v52 = vadd.f32 %v679_v50, %v678_v45 }
 0x222   :  { %v770_v19 = vrot.slane %v769_v48, 4 }
 0x223   :  { %v682_v20 = vadd.f32 %v681_v53, %v680_v52  ;;  %v989_v52 = vld [vmem:[%s1607_s3] ss:$0 sm:$0xff] }
 0x224   :  { %v771_v55 = vadd.f32 %v770_v19, %v769_v48 }
 0x225   :  { %v683_v56 = vrot.slane %v682_v20, 4 }
 0x226   :  { %v772_v57 = vrot.slane %v771_v55, 2 }
 0x227   :  { %v684_v49 = vadd.f32 %v683_v56, %v682_v20  ;;  %v990_v56 = vld [vmem:[%s1608_s4] ss:$0 sm:$0xff] }
 0x228   :  { %v773_v51 = vadd.f32 %v772_v57, %v771_v55 }
 0x229   :  { %v685_v60 = vrot.slane %v684_v49, 2 }
 0x22a   :  { %v774_v61 = vrot.slane %v773_v51, 1 }
 0x22b   :  { %v686_v62 = vadd.f32 %v685_v60, %v684_v49 }
 0x22c   :  { %v775_v63 = vadd.f32 %v774_v61, %v773_v51 }
 0x22d   :  { %v687_v0 = vrot.slane %v686_v62, 1 }
 0x22e   :  { %v776_v54 = vmul.f32 0.03125, %v775_v63 }
 0x22f   :  { %v688_v1 = vadd.f32 %v687_v0, %v686_v62 }
 0x230   :  { %v777_v2 = vsub.f32 %v657_v32, %v776_v54  ;;  %v778_v3 = vsub.f32 %v1049_v27, %v776_v54  ;;  %v1548_v4 = vsub.f32 %v667_v40, %v776_v54  ;;  %v1550_v5 = vsub.f32 %v1052_v35, %v776_v54 }
 0x231   :  { %v690_v6 = vmul.f32 0.03125, %v688_v1 }
 0x232   :  { %v781_v7 = vmul.f32 %v777_v2, %v777_v2  ;;  %v782_v10 = vmul.f32 %v778_v3, %v778_v3  ;;  %v783_v39 = vmul.f32 %v1548_v4, %v1548_v4  ;;  %v784_v14 = vmul.f32 %v1550_v5, %v1550_v5 }
 0x233   :  { %v691_v8 = vsub.f32 %v637_v34, %v690_v6  ;;  %v692_v58 = vsub.f32 %v1043_v31, %v690_v6  ;;  %v693_v9 = vsub.f32 %v647_v47, %v690_v6  ;;  %v694_v13 = vsub.f32 %v1046_v42, %v690_v6 }
 0x234   :  { %v785_v36 = vsel %vm254_vm6, %v781_v7, 0.0  ;;  %v786_v16 = vsel %vm254_vm6, %v782_v10, 0.0  ;;  %v788_v24 = vsel %vm254_vm6, %v783_v39, 0.0  ;;  %v790_v28 = vsel %vm254_vm6, %v784_v14, 0.0 }
 0x235   :  { %v787_v17 = vadd.f32 %v786_v16, %v785_v36  ;;  %v695_v18 = vmul.f32 %v691_v8, %v691_v8  ;;  %v696_v22 = vmul.f32 %v692_v58, %v692_v58  ;;  %v697_v23 = vmul.f32 %v693_v9, %v693_v9 }
 0x236   :  { %v698_v21 = vmul.f32 %v694_v13, %v694_v13 }
 0x237   :  { %v789_v25 = vadd.f32 %v788_v24, %v787_v17  ;;  %v699_v12 = vsel %vm254_vm6, %v695_v18, 0.0  ;;  %v700_v26 = vsel %vm254_vm6, %v696_v22, 0.0  ;;  %v702_v30 = vsel %vm254_vm6, %v697_v23, 0.0 }
 0x238   :  { %v701_v59 = vadd.f32 %v700_v26, %v699_v12  ;;  %v704_v31 = vsel %vm254_vm6, %v698_v21, 0.0 }
 0x239   :  { %v791_v29 = vadd.f32 %v790_v28, %v789_v25 }
 0x23a   :  { %v703_v11 = vadd.f32 %v702_v30, %v701_v59 }
 0x23b   :  { %v792_v27 = vrot.slane %v791_v29, 4 }
 0x23c   :  { %v705_v32 = vadd.f32 %v704_v31, %v703_v11 }
 0x23d   :  { %v793_v33 = vadd.f32 %v792_v27, %v791_v29 }
 0x23e   :  { %v706_v34 = vrot.slane %v705_v32, 4 }
 0x23f   :  { %v794_v35 = vrot.slane %v793_v33, 2 }
 0x240   :  { %v707_v37 = vadd.f32 %v706_v34, %v705_v32 }
 0x241   :  { %v795_v38 = vadd.f32 %v794_v35, %v793_v33 }
 0x242   :  { %v708_v15 = vrot.slane %v707_v37, 2 }
 0x243   :  { %v796_v40 = vrot.slane %v795_v38, 1 }
 0x244   :  { %v709_v41 = vadd.f32 %v708_v15, %v707_v37 }
 0x245   :  { %v797_v42 = vadd.f32 %v796_v40, %v795_v38 }
 0x246   :  { %v710_v43 = vrot.slane %v709_v41, 1 }
 0x247   :  { %v798_v44 = vmul.f32 0.03125, %v797_v42 }
 0x248   :  { %v711_v45 = vadd.f32 %v710_v43, %v709_v41 }
 0x249   :  { %v799_v46 = vadd.f32 1e-05, %v798_v44 }
 0x24a   :  { %v712_v47 = vmul.f32 0.03125, %v711_v45 }
 0x24b   :  { %1088 = vrsqrt.f32 %v799_v46 }
 0x24c   :  { %v713_v48 = vadd.f32 1e-05, %v712_v47 }
 0x24e   :  { %1090 = vrsqrt.f32 %v713_v48 }
 0x258   :  { %v1089_v50 = vpop.eup %1088 }
 0x259   :  { %v801_v19 = vmul.f32 %v1089_v50, %v777_v2  ;;  %v802_v20 = vmul.f32 %v1089_v50, %v778_v3  ;;  %v803_v54 = vmul.f32 %v1089_v50, %v1548_v4 }
 0x25b   :  { %v1091_v53 = vpop.eup %1090  ;;  %v805_v55 = vmul.f32 %v989_v52, %v801_v19  ;;  %v806_v1 = vmul.f32 %v989_v52, %v802_v20 }
 0x25c   :  { %v715_v57 = vmul.f32 %v1091_v53, %v691_v8  ;;  %v716_v49 = vmul.f32 %v1091_v53, %v692_v58  ;;  %v717_v51 = vmul.f32 %v1091_v53, %v693_v9  ;;  %v718_v60 = vmul.f32 %v1091_v53, %v694_v13 }
 0x25d   :  { %v809_v6 = vadd.f32 %v990_v56, %v805_v55  ;;  %v804_v8 = vmul.f32 %v1089_v50, %v1550_v5  ;;  %v807_v58 = vmul.f32 %v989_v52, %v803_v54  ;;  %v810_v13 = vadd.f32 %v990_v56, %v806_v1 }
 0x25e   :  { %v725_v61 = vmul.f32 %v989_v52, %v715_v57  ;;  %v726_v62 = vmul.f32 %v989_v52, %v716_v49  ;;  %v727_v63 = vmul.f32 %v989_v52, %v717_v51  ;;  %v728_v0 = vmul.f32 %v989_v52, %v718_v60 }
 0x25f   :  { %v813_v9 = vsub.f32 0.0, %v809_v6  ;;  %v808_v4 = vmul.f32 %v989_v52, %v804_v8  ;;  %v811_v24 = vadd.f32 %v990_v56, %v807_v58  ;;  %v814_v25 = vsub.f32 0.0, %v810_v13 }
 0x260   :  { %v735_v2 = vadd.f32 %v990_v56, %v725_v61  ;;  %v736_v7 = vadd.f32 %v990_v56, %v726_v62  ;;  %v737_v3 = vadd.f32 %v990_v56, %v727_v63  ;;  %v738_v10 = vadd.f32 %v990_v56, %v728_v0 }
 0x261   :  { %v817_v21 = vmul.f32 1.442695, %v813_v9  ;;  %v812_v12 = vadd.f32 %v990_v56, %v808_v4  ;;  %v815_v26 = vsub.f32 0.0, %v811_v24  ;;  %v819_v28 = vmul.f32 1.442695, %v814_v25 }
 0x262   :  { %v739_v39 = vsub.f32 0.0, %v735_v2  ;;  %v740_v14 = vsub.f32 0.0, %v736_v7  ;;  %v741_v36 = vsub.f32 0.0, %v737_v3  ;;  %v742_v16 = vsub.f32 0.0, %v738_v10 }
 0x263   :  { %v816_v5 = vsub.f32 0.0, %v812_v12  ;;  %v821_v59 = vmul.f32 1.442695, %v815_v26 }
 0x264   :  { %v743_v17 = vmul.f32 1.442695, %v739_v39  ;;  %v745_v18 = vmul.f32 1.442695, %v740_v14  ;;  %v747_v22 = vmul.f32 1.442695, %v741_v36 }
 0x265   :  { %v749_v23 = vmul.f32 1.442695, %v742_v16  ;;  %v823_v30 = vmul.f32 1.442695, %v816_v5 }
 0x266   :  { %1092 = vpow2.f32 %v743_v17 }
 0x267   :  { %1094 = vpow2.f32 %v745_v18 }
 0x268   :  { %1096 = vpow2.f32 %v747_v22 }
 0x269   :  { %1098 = vpow2.f32 %v749_v23 }
 0x26a   :  { %1100 = vpow2.f32 %v817_v21 }
 0x26b   :  { %1102 = vpow2.f32 %v819_v28 }
 0x26c   :  { %1104 = vpow2.f32 %v821_v59 }
 0x273   :  { %v1093_v29 = vpop.eup %1092 }
 0x274   :  { %v1095_v11 = vpop.eup %1094  ;;  %v751_v27 = vadd.f32 1.0, %v1093_v29 }
 0x275   :  { %v1097_v31 = vpop.eup %1096  ;;  %v752_v33 = vadd.f32 1.0, %v1095_v11 }
 0x276   :  { %v1099_v32 = vpop.eup %1098  ;;  %v753_v34 = vadd.f32 1.0, %v1097_v31  ;;  %1106 = vrcp.f32 %v751_v27 }
 0x277   :  { %1108 = vpow2.f32 %v823_v30  ;;  %v754_v35 = vadd.f32 1.0, %v1099_v32  ;;  %v1101_v37 = vpop.eup %1100 }
 0x278   :  { %1110 = vrcp.f32 %v753_v34  ;;  %v825_v38 = vadd.f32 1.0, %v1101_v37  ;;  %v1103_v15 = vpop.eup %1102 }
 0x279   :  { %1112 = vrcp.f32 %v752_v33  ;;  %v826_v40 = vadd.f32 1.0, %v1103_v15  ;;  %v1105_v41 = vpop.eup %1104 }
 0x27a   :  { %1114 = vrcp.f32 %v754_v35  ;;  %v827_v44 = vadd.f32 1.0, %v1105_v41 }
 0x27b   :  { %1116 = vrcp.f32 %v825_v38 }
 0x27c   :  { %1118 = vrcp.f32 %v826_v40 }
 0x27d   :  { %1120 = vrcp.f32 %v827_v44 }
 0x283   :  { %v1107_v42 = vpop.eup %1106 }
 0x284   :  { %v1109_v43 = vpop.eup %1108  ;;  %837 = vxpose.xlu1.b32.start [1/2] (short) (narrow) %v1107_v42, 16 }
 0x285   :  { %v1111_v45 = vpop.eup %1110  ;;  %v828_v47 = vadd.f32 1.0, %v1109_v43 }
 0x286   :  { %869 = vxpose.xlu0.b32.start [1/2] (short) (narrow) %v1111_v45, 16  ;;  %v1113_v46 = vpop.eup %1112 }
 0x287   :  { %v1115_v48 = vpop.eup %1114  ;;  %1122 = vrcp.f32 %v828_v47 }
 0x288   :  { %838 = vxpose.xlu1.b32.end [2/2] (short) (narrow) %v1113_v46, 16  ;;  %v1117_v50 = vpop.eup %1116 }
 0x289   :  { %v1119_v52 = vpop.eup %1118 }
 0x28a   :  { %870 = vxpose.xlu0.b32.end [2/2] (short) (narrow) %v1115_v48, 16  ;;  %v1121_v19 = vpop.eup %1120 }
 0x28e   :  { %905 = vxpose.xlu0.b32.start [1/2] (short) (narrow) %v1117_v50, 16 }
 0x292   :  { %906 = vxpose.xlu0.b32.end [2/2] (short) (narrow) %v1119_v52, 16 }
 0x294   :  { %v1123_v53 = vpop.eup %1122 }
 0x296   :  { %937 = vxpose.xlu0.b32.start [1/2] (short) (narrow) %v1121_v19, 16 }
 0x29a   :  { %938 = vxpose.xlu0.b32.end [2/2] (short) (narrow) %v1123_v53, 16 }
 0x300   :  { %v853_v20 = vpop.trf.xlu1 }
 0x301   :  { %901 = vst.msk [vmem:[%s1609_s5] sm:$0xff] %vm254_vm6, %v853_v20 }
 0x302   :  { %v885_v55 = vpop.trf.xlu0 }
 0x303   :  { %903 = vst.msk [vmem:[%s1609_s5 + $0x10] sm:$0xff] %vm254_vm6, %v885_v55 }
 0x304   :  { %v854_v56 = vpop.trf.xlu1 }
 0x305   :  { %902 = vst.msk [vmem:[%s1609_s5 + $0x8] sm:$0xff] %vm254_vm6, %v854_v56 }
 0x306   :  { %v886_v57 = vpop.trf.xlu0 }
 0x307   :  { %904 = vst.msk [vmem:[%s1609_s5 + $0x18] sm:$0xff] %vm254_vm6, %v886_v57 }
 0x30a   :  { %v921_v49 = vpop.trf.xlu0 }
 0x30b   :  { %969 = vst.msk [vmem:[%s1610_s6] sm:$0xff] %vm254_vm6, %v921_v49 }
 0x30e   :  { %v922_v51 = vpop.trf.xlu0 }
 0x30f   :  { %970 = vst.msk [vmem:[%s1610_s6 + $0x8] sm:$0xff] %vm254_vm6, %v922_v51 }
 0x312   :  { %v953_v60 = vpop.trf.xlu0 }
 0x313   :  { %971 = vst.msk [vmem:[%s1610_s6 + $0x10] sm:$0xff] %vm254_vm6, %v953_v60 }
 0x316   :  { %v954_v61 = vpop.trf.xlu0 }
 0x317   :  { %972 = vst.msk [vmem:[%s1610_s6 + $0x18] sm:$0xff] %vm254_vm6, %v954_v61 }

</bundles_post_ra>
